<compile_context>
chip_gen: v5e
topology: v5e:2x2
jax: 0.10.0
libtpu: 0.0.40
codegen_flags: <defaults>
</compile_context>

<pallas_src>
import functools

import jax
import jax.numpy as jnp
from jax.experimental import pallas as pl
from jax.experimental.pallas import tpu as pltpu

LANE = 128            # lane width  (last-dim tiling)
SUBLANE = 8           # sublane width (second-to-last dim tiling, f32)
_FALLBACK_VMEM_LIMIT = 48 * 1024 * 1024


def _round_up(v, m):
    return ((v + m - 1) // m) * m


def _tpu_info():
    try:
        return pltpu.get_tpu_info()
    except Exception:
        return None


def _vmem_limit_bytes():
    """Per-generation VMEM budget (~85% of physical; 48 MiB fallback)."""
    info = _tpu_info()
    cap = getattr(info, "vmem_capacity_bytes", None) if info is not None else None
    if not isinstance(cap, int) or cap <= 0:
        return _FALLBACK_VMEM_LIMIT
    return max(32 * 1024 * 1024, int(cap * 0.85))


def _tensorcore_count():
    """TensorCores per chip (1 on v5e/v6e; 2 on v7x).  Conservative default 1."""
    info = _tpu_info()
    if info is not None:
        for attr in ("num_cores", "core_count", "num_tensorcores",
                     "tensorcore_count", "num_cores_per_chip", "cores_per_chip"):
            v = getattr(info, attr, None)
            if isinstance(v, int) and v > 0:
                return v
    return 1


def _const_spec(shape, index_map):
    """BlockSpec for grid-invariant operands: request single buffering
    (no point double-buffering a block whose index map never changes)."""
    try:
        return pl.BlockSpec(shape, index_map, pipeline_mode=pl.Buffered(1))
    except Exception:                       # older API without pipeline_mode
        return pl.BlockSpec(shape, index_map)


def _pick_time_chunk(t, *, bb, hp, dp, vmem_limit, max_tt=32):
    """Largest divisor of T that fits the per-chunk VMEM budget (<= max_tt)."""
    # Per unit of tt: gx scratch (bb*4Hp f32) + 2x double-buffered input block
    # (bb*Dp bf16) + 2x double-buffered output block (bb*Hp bf16).
    per_tt = bb * (16 * hp + 4 * dp + 4 * hp)
    budget = vmem_limit // 3                # leave room for weights / state
    cap = max(1, min(max_tt, budget // max(per_tt, 1)))
    for tt in range(min(t, cap), 0, -1):
        if t % tt == 0:
            return tt
    return 1


def _unroll_for(tt, bb, hp):
    """Full unroll only while the per-step live gate tile (bb x 4Hp f32) is
    small enough to avoid vreg spills; otherwise cap the unroll at 8."""
    if bb * 4 * hp * 4 <= 128 * 1024:
        return True
    return min(tt, 8)


def _fast_sigmoid(x):
    # sigmoid(x) = 0.5*tanh(0.5*x) + 0.5 : one EUP op instead of exp + divide
    # on the latency-bound recurrent chain.
    return 0.5 * jnp.tanh(0.5 * x) + 0.5


# --------------------------------------------------------------------------
# LSTM cell update (shared by both recurrent kernels).
# gx_t already contains x@W_ih^T + (b_ih+b_hh); gate order is PyTorch's
# (i, f, g, o), each gate occupying a lane-aligned Hp-wide column block.
# --------------------------------------------------------------------------
def _lstm_cell(gx_t, h_prev, c_prev, whh, hp):
    # TODO(synk): keep whh stationary in the MXU across the unrolled steps via
    # pltpu.matmul_push_rhs / matmul_acc_lhs / matmul_pop.
    gates = gx_t + jnp.dot(h_prev.astype(whh.dtype), whh,
                           preferred_element_type=jnp.float32)
    i_g = _fast_sigmoid(gates[:, 0 * hp:1 * hp])
    f_g = _fast_sigmoid(gates[:, 1 * hp:2 * hp])
    g_g = jnp.tanh(gates[:, 2 * hp:3 * hp])
    o_g = _fast_sigmoid(gates[:, 3 * hp:4 * hp])
    c_new = f_g * c_prev + i_g * g_g
    h_new = o_g * jnp.tanh(c_new)
    return h_new, c_new


# --------------------------------------------------------------------------
# Fused recurrent kernel for intermediate layers:
#   per time chunk: one (tt*bb, D)@(D, 4Hp) projection matmul into VMEM
#   scratch, then tt recurrent steps; emits the (tt, bb, Hp) bf16 hidden
#   sequence chunk for the next layer.  h/c state lives in f32 VMEM scratch.
# Grid = (batch_blocks, time_chunks); time axis must stay sequential.
# --------------------------------------------------------------------------
def _lstm_seq_kernel(seq_ref, w_ih_ref, b_ref, whh_ref, hseq_ref,
                     gx_sc, h_sc, c_sc, *, hp, tt, bb, unroll):
    @pl.when(pl.program_id(1) == 0)
    def _():
        h_sc[...] = jnp.zeros_like(h_sc)
        c_sc[...] = jnp.zeros_like(c_sc)

    # Fused input projection for the whole chunk (no gx HBM round trip).
    xc = seq_ref[...].reshape(tt * bb, -1)                    # bf16
    gx_sc[...] = (jnp.dot(xc, w_ih_ref[...],
                          preferred_element_type=jnp.float32)
                  + b_ref[...]).reshape(tt, bb, 4 * hp)

    whh = whh_ref[...]                                        # (Hp, 4Hp) bf16

    def step(t, carry):
        h_prev, c_prev = carry
        h_new, c_new = _lstm_cell(gx_sc[t], h_prev, c_prev, whh, hp)
        hseq_ref[t] = h_new.astype(hseq_ref.dtype)
        return h_new, c_new

    h_last, c_last = jax.lax.fori_loop(0, tt, step, (h_sc[...], c_sc[...]),
                                       unroll=unroll)
    h_sc[...] = h_last
    c_sc[...] = c_last


def lstm_seq(seq, layer, *, hp, tt, bb, vmem_limit):
    """seq: (T, Bp, Dp) bf16 -> (T, Bp, Hp) bf16 hidden sequence."""
    T, Bp, Dp = seq.shape
    G = 4 * hp
    nb = Bp // bb
    unroll = _unroll_for(tt, bb, hp)
    return pl.pallas_call(
        functools.partial(_lstm_seq_kernel, hp=hp, tt=tt, bb=bb, unroll=unroll),
        out_shape=jax.ShapeDtypeStruct((T, Bp, hp), jnp.bfloat16),
        grid_spec=pltpu.PrefetchScalarGridSpec(
            num_scalar_prefetch=0,
            grid=(nb, T // tt),
            in_specs=[
                pl.BlockSpec((tt, bb, Dp), lambda b, c: (c, b, 0)),
                _const_spec((Dp, G), lambda b, c: (0, 0)),
                _const_spec((1, G), lambda b, c: (0, 0)),
                _const_spec((hp, G), lambda b, c: (0, 0)),
            ],
            out_specs=pl.BlockSpec((tt, bb, hp), lambda b, c: (c, b, 0)),
            scratch_shapes=[
                pltpu.VMEM((tt, bb, G), jnp.float32),   # gx chunk (f32)
                pltpu.VMEM((bb, hp), jnp.float32),      # h state (f32)
                pltpu.VMEM((bb, hp), jnp.float32),      # c state (f32)
            ],
        ),
        compiler_params=pltpu.CompilerParams(
            dimension_semantics=("parallel", "arbitrary"),
            vmem_limit_bytes=vmem_limit,
        ),
    )(seq, layer["w_ih_t"], layer["bias"], layer["w_hh_t"])


# --------------------------------------------------------------------------
# Fused recurrent kernel for the LAST layer: never writes the hidden sequence
# to HBM; at the final time chunk it fuses the classifier (Linear) and emits
# only the (Bp, Cp) logits.  The logits block index is constant along the
# (sequential, "arbitrary") time axis, so the output stays resident and is
# written exactly once, in the last chunk.
# --------------------------------------------------------------------------
def _lstm_head_kernel(seq_ref, w_ih_ref, b_ref, whh_ref, wc_ref, bc_ref,
                      out_ref, gx_sc, h_sc, c_sc, *, hp, tt, bb, unroll):
    chunk = pl.program_id(1)

    @pl.when(chunk == 0)
    def _():
        h_sc[...] = jnp.zeros_like(h_sc)
        c_sc[...] = jnp.zeros_like(c_sc)

    xc = seq_ref[...].reshape(tt * bb, -1)
    gx_sc[...] = (jnp.dot(xc, w_ih_ref[...],
                          preferred_element_type=jnp.float32)
                  + b_ref[...]).reshape(tt, bb, 4 * hp)

    whh = whh_ref[...]

    def step(t, carry):
        h_prev, c_prev = carry
        return _lstm_cell(gx_sc[t], h_prev, c_prev, whh, hp)

    h_last, c_last = jax.lax.fori_loop(0, tt, step, (h_sc[...], c_sc[...]),
                                       unroll=unroll)
    h_sc[...] = h_last
    c_sc[...] = c_last

    @pl.when(chunk == pl.num_programs(1) - 1)
    def _():
        logits = jnp.dot(h_last.astype(wc_ref.dtype), wc_ref[...],
                         preferred_element_type=jnp.float32) + bc_ref[...]
        out_ref[...] = logits.astype(out_ref.dtype)


def lstm_head(seq, layer, w_cls_t, b_cls, *, hp, tt, bb, vmem_limit):
    """Last LSTM layer + fused classifier.  Returns (Bp, Cp) f32 logits."""
    T, Bp, Dp = seq.shape
    G = 4 * hp
    Cp = w_cls_t.shape[1]
    nb = Bp // bb
    unroll = _unroll_for(tt, bb, hp)
    return pl.pallas_call(
        functools.partial(_lstm_head_kernel, hp=hp, tt=tt, bb=bb,
                          unroll=unroll),
        out_shape=jax.ShapeDtypeStruct((Bp, Cp), jnp.float32),
        grid_spec=pltpu.PrefetchScalarGridSpec(
            num_scalar_prefetch=0,
            grid=(nb, T // tt),
            in_specs=[
                pl.BlockSpec((tt, bb, Dp), lambda b, c: (c, b, 0)),
                _const_spec((Dp, G), lambda b, c: (0, 0)),
                _const_spec((1, G), lambda b, c: (0, 0)),
                _const_spec((hp, G), lambda b, c: (0, 0)),
                _const_spec((hp, Cp), lambda b, c: (0, 0)),
                _const_spec((1, Cp), lambda b, c: (0, 0)),
            ],
            out_specs=pl.BlockSpec((bb, Cp), lambda b, c: (b, 0)),
            scratch_shapes=[
                pltpu.VMEM((tt, bb, G), jnp.float32),   # gx chunk (f32)
                pltpu.VMEM((bb, hp), jnp.float32),      # h state (f32)
                pltpu.VMEM((bb, hp), jnp.float32),      # c state (f32)
            ],
        ),
        compiler_params=pltpu.CompilerParams(
            dimension_semantics=("parallel", "arbitrary"),
            vmem_limit_bytes=vmem_limit,
        ),
    )(seq, layer["w_ih_t"], layer["bias"], layer["w_hh_t"], w_cls_t, b_cls)


# --------------------------------------------------------------------------
# Parameter handling: raw (PyTorch-layout, f32) -> packed kernel layout
# (per-gate zero-padded to Hp, transposed, bf16 weights, combined bias).
# --------------------------------------------------------------------------
def _pack_gate_matrix(w, d_pad, h_pad):
    """w: (4H, D) PyTorch layout [i;f;g;o] -> (Dp, 4*Hp), per-gate padded."""
    four_h, d = w.shape
    h = four_h // 4
    w = w.reshape(4, h, d)                    # (4, H, D)
    w = jnp.transpose(w, (2, 0, 1))           # (D, 4, H)
    w = jnp.pad(w, ((0, d_pad - d), (0, 0), (0, h_pad - h)))
    return w.reshape(d_pad, 4 * h_pad)


def _pack_gate_bias(b, h_pad):
    """b: (4H,) -> (1, 4*Hp), per-gate padded."""
    h = b.shape[0] // 4
    b = b.reshape(4, h)
    b = jnp.pad(b, ((0, 0), (0, h_pad - h)))
    return b.reshape(1, 4 * h_pad)


def init_raw_params(key, in_dim, hidden_dim, n_layer, n_class):
    """Random params in PyTorch nn.LSTM / nn.Linear layout (f32)."""
    scale = float(hidden_dim) ** -0.5
    raw = {"lstm": []}
    k = key
    for layer in range(n_layer):
        d = in_dim if layer == 0 else hidden_dim
        k, k1, k2, k3, k4 = jax.random.split(k, 5)
        raw["lstm"].append({
            "w_ih": jax.random.uniform(k1, (4 * hidden_dim, d), jnp.float32,
                                       -scale, scale),
            "w_hh": jax.random.uniform(k2, (4 * hidden_dim, hidden_dim),
                                       jnp.float32, -scale, scale),
            "b_ih": jax.random.uniform(k3, (4 * hidden_dim,), jnp.float32,
                                       -scale, scale),
            "b_hh": jax.random.uniform(k4, (4 * hidden_dim,), jnp.float32,
                                       -scale, scale),
        })
    k, k1, k2 = jax.random.split(k, 3)
    raw["cls_w"] = jax.random.uniform(k1, (n_class, hidden_dim), jnp.float32,
                                      -scale, scale)
    raw["cls_b"] = jax.random.uniform(k2, (n_class,), jnp.float32,
                                      -scale, scale)
    return raw


def pack_params(raw, *, in_dim, hidden_dim, n_class):
    d_pad = _round_up(in_dim, LANE)
    h_pad = _round_up(hidden_dim, LANE)
    c_pad = _round_up(n_class, LANE)
    lstm = []
    for k, layer in enumerate(raw["lstm"]):
        dp = d_pad if k == 0 else h_pad
        lstm.append({
            "w_ih_t": _pack_gate_matrix(layer["w_ih"], dp, h_pad)
                      .astype(jnp.bfloat16),
            "w_hh_t": _pack_gate_matrix(layer["w_hh"], h_pad, h_pad)
                      .astype(jnp.bfloat16),
            "bias": _pack_gate_bias(layer["b_ih"] + layer["b_hh"], h_pad)
                    .astype(jnp.float32),
        })
    w_cls = jnp.pad(raw["cls_w"],
                    ((0, c_pad - n_class), (0, h_pad - hidden_dim)))
    b_cls = jnp.pad(raw["cls_b"], ((0, c_pad - n_class),))
    return {
        "lstm": lstm,
        "cls_w_t": w_cls.T.astype(jnp.bfloat16),      # (Hp, Cp)
        "cls_b": b_cls[None, :].astype(jnp.float32),  # (1, Cp)
        "dims": dict(in_dim=in_dim, hidden_dim=hidden_dim, n_class=n_class,
                     Dp=d_pad, Hp=h_pad, Cp=c_pad),
    }


# --------------------------------------------------------------------------
# Full forward pass (matches the PyTorch module semantics).
# --------------------------------------------------------------------------
def rnn_forward(x, params):
    """x: (B, T, in_dim) batch_first, f32.  Returns (B, n_class) f32."""
    dims = params["dims"]
    B, T, D = x.shape
    Bp = _round_up(B, SUBLANE)
    Hp, Dp = dims["Hp"], dims["Dp"]

    vmem_limit = _vmem_limit_bytes()
    # Split the padded batch only when a multi-TensorCore chip is detected
    # (v7x).  On single-TC v5e/v6e a split would just double the serial
    # recurrence length for zero parallelism gain.
    n_tc = _tensorcore_count()
    bb = Bp // 2 if (n_tc >= 2 and Bp % 16 == 0) else Bp

    # Pad batch/feature dims once, cast to bf16 (halves the layer-0 stream),
    # and make the layout time-major for lane/sublane-dense per-step access.
    x = jnp.pad(x, ((0, Bp - B), (0, 0), (0, Dp - D)))
    seq = jnp.transpose(x, (1, 0, 2)).astype(jnp.bfloat16)    # (T, Bp, Dp)

    tt = _pick_time_chunk(T, bb=bb, hp=Hp, dp=max(Dp, Hp),
                          vmem_limit=vmem_limit)

    n_layers = len(params["lstm"])
    out = None
    for li, layer in enumerate(params["lstm"]):
        if li == n_layers - 1:
            out = lstm_head(seq, layer, params["cls_w_t"], params["cls_b"],
                            hp=Hp, tt=tt, bb=bb, vmem_limit=vmem_limit)
        else:
            seq = lstm_seq(seq, layer, hp=Hp, tt=tt, bb=bb,
                           vmem_limit=vmem_limit)
    return out[:B, :dims["n_class"]]


# --------------------------------------------------------------------------
# Pure-JAX f32 reference (replicates PyTorch nn.LSTM + nn.Linear exactly).
# --------------------------------------------------------------------------
def reference_forward(x, raw):
    B = x.shape[0]
    seq = jnp.transpose(x, (1, 0, 2))                 # (T, B, D)
    for layer in raw["lstm"]:
        w_ih, w_hh = layer["w_ih"], layer["w_hh"]
        b = layer["b_ih"] + layer["b_hh"]
        H = w_hh.shape[1]

        def cell(carry, x_t, w_ih=w_ih, w_hh=w_hh, b=b):
            h, c = carry
            gates = x_t @ w_ih.T + h @ w_hh.T + b
            i_g, f_g, g_g, o_g = jnp.split(gates, 4, axis=-1)
            c = jax.nn.sigmoid(f_g) * c + jax.nn.sigmoid(i_g) * jnp.tanh(g_g)
            h = jax.nn.sigmoid(o_g) * jnp.tanh(c)
            return (h, c), h

        init = (jnp.zeros((B, H), jnp.float32), jnp.zeros((B, H), jnp.float32))
        _, seq = jax.lax.scan(cell, init, seq)
    return seq[-1] @ raw["cls_w"].T + raw["cls_b"]


if __name__ == "__main__":
    # Small deterministic shapes consistent with the module.
    B, T = 2, 8
    in_dim, hidden_dim, n_layer, n_class = 16, 32, 2, 10

    key = jax.random.PRNGKey(0)
    key, kx = jax.random.split(key)
    x = jax.random.normal(kx, (B, T, in_dim), dtype=jnp.float32)

    # TODO(synk): loading the trained 'RNN_NMNIST_MB_SVHN.pth' checkpoint has
    # no in-script equivalent; random weights stand in for it.
    raw = init_raw_params(key, in_dim, hidden_dim, n_layer, n_class)
    params = pack_params(raw, in_dim=in_dim, hidden_dim=hidden_dim,
                         n_class=n_class)

    out = rnn_forward(x, params)
    jax.block_until_ready(out)
    assert out.shape == (B, n_class)

    # Loose tolerance: kernel matmuls use bf16 operands with f32 accumulation
    # and a bf16 inter-layer hidden sequence.
    ref = reference_forward(x, raw)
    max_err = float(jnp.max(jnp.abs(out - ref)))
    assert max_err < 0.1, f"max abs error vs f32 reference: {max_err}"

    print("KERNEL_OK")
</pallas_src>

<mosaic_0001>
module attributes {stable_mosaic.version = 11 : i64} {
  func.func @_lstm_seq_kernel(%arg0: i32, %arg1: i32, %arg2: memref<8x8x128xbf16, #tpu.memory_space<vmem>>, %arg3: memref<128x512xbf16, #tpu.memory_space<vmem>>, %arg4: memref<1x512xf32, #tpu.memory_space<vmem>>, %arg5: memref<128x512xbf16, #tpu.memory_space<vmem>>, %arg6: memref<8x8x128xbf16, #tpu.memory_space<vmem>>, %arg7: memref<8x8x512xf32, #tpu.memory_space<vmem>>, %arg8: memref<8x128xf32, #tpu.memory_space<vmem>>, %arg9: memref<8x128xf32, #tpu.memory_space<vmem>>) attributes {dimension_semantics = [#tpu.dimension_semantics<parallel>, #tpu.dimension_semantics<arbitrary>], iteration_bounds = array<i64: 1, 1>, scalar_prefetch = 0 : i64, scratch_operands = 3 : i64, tpu.core_type = #tpu.core_type<tc>, window_params = [{transform_indices = @transform_0, window_bounds = array<i64: 8, 8, 128>}, {pipeline_mode = #tpu.pipeline_mode<synchronous>, transform_indices = @transform_1, window_bounds = array<i64: 128, 512>}, {pipeline_mode = #tpu.pipeline_mode<synchronous>, transform_indices = @transform_2, window_bounds = array<i64: 1, 512>}, {pipeline_mode = #tpu.pipeline_mode<synchronous>, transform_indices = @transform_3, window_bounds = array<i64: 128, 512>}, {transform_indices = @transform_4, window_bounds = array<i64: 8, 8, 128>}]} {
    %c0_i32 = arith.constant 0 : i32
    %0 = arith.cmpi eq, %arg1, %c0_i32 : i32
    %1 = arith.extui %0 : i1 to i32
    %c0_i32_0 = arith.constant 0 : i32
    %2 = arith.cmpi ne, %1, %c0_i32_0 : i32
    scf.if %2 {
      %cst_133 = arith.constant 0.000000e+00 : f32
      %353 = vector.broadcast %cst_133 : f32 to vector<8x128xf32>
      %c0_134 = arith.constant 0 : index
      %c0_135 = arith.constant 0 : index
      %354 = vector.load %arg8[%c0_134, %c0_135] : memref<8x128xf32, #tpu.memory_space<vmem>>, vector<8x128xf32>
      tpu.vector_store %arg8[%c0_134, %c0_135], %353 {strides = array<i32>} : memref<8x128xf32, #tpu.memory_space<vmem>>, vector<8x128xf32>,
      %cst_136 = arith.constant 0.000000e+00 : f32
      %355 = vector.broadcast %cst_136 : f32 to vector<8x128xf32>
      %c0_137 = arith.constant 0 : index
      %c0_138 = arith.constant 0 : index
      %356 = vector.load %arg9[%c0_137, %c0_138] : memref<8x128xf32, #tpu.memory_space<vmem>>, vector<8x128xf32>
      tpu.vector_store %arg9[%c0_137, %c0_138], %355 {strides = array<i32>} : memref<8x128xf32, #tpu.memory_space<vmem>>, vector<8x128xf32>,
    } else {
    }
    %c0 = arith.constant 0 : index
    %c0_1 = arith.constant 0 : index
    %c0_2 = arith.constant 0 : index
    %3 = vector.load %arg2[%c0, %c0_1, %c0_2] : memref<8x8x128xbf16, #tpu.memory_space<vmem>>, vector<8x8x128xbf16>
    %4 = vector.shape_cast %3 : vector<8x8x128xbf16> to vector<64x128xbf16>
    %c0_3 = arith.constant 0 : index
    %c0_4 = arith.constant 0 : index
    %5 = vector.load %arg3[%c0_3, %c0_4] : memref<128x512xbf16, #tpu.memory_space<vmem>>, vector<128x512xbf16>
    %cst = arith.constant dense<0.000000e+00> : vector<64x512xf32>
    %6 = tpu.matmul %4, %5, %cst {dimension_numbers = #tpu.dot_dimension_numbers<[1], [0], [0], [1], [0, 0, 1, 1], [], []>} : vector<64x128xbf16>, vector<128x512xbf16>, vector<64x512xf32> -> vector<64x512xf32>
    %c0_5 = arith.constant 0 : index
    %c0_6 = arith.constant 0 : index
    %7 = vector.load %arg4[%c0_5, %c0_6] : memref<1x512xf32, #tpu.memory_space<vmem>>, vector<1x512xf32>
    %8 = vector.broadcast %7 : vector<1x512xf32> to vector<64x512xf32>
    %9 = arith.addf %6, %8 : vector<64x512xf32>
    %10 = vector.shape_cast %9 : vector<64x512xf32> to vector<8x8x512xf32>
    %c0_7 = arith.constant 0 : index
    %c0_8 = arith.constant 0 : index
    %c0_9 = arith.constant 0 : index
    %11 = vector.load %arg7[%c0_7, %c0_8, %c0_9] : memref<8x8x512xf32, #tpu.memory_space<vmem>>, vector<8x8x512xf32>
    tpu.vector_store %arg7[%c0_7, %c0_8, %c0_9], %10 {strides = array<i32>} : memref<8x8x512xf32, #tpu.memory_space<vmem>>, vector<8x8x512xf32>,
    %c0_10 = arith.constant 0 : index
    %c0_11 = arith.constant 0 : index
    %12 = vector.load %arg5[%c0_10, %c0_11] : memref<128x512xbf16, #tpu.memory_space<vmem>>, vector<128x512xbf16>
    %c0_12 = arith.constant 0 : index
    %c0_13 = arith.constant 0 : index
    %13 = vector.load %arg8[%c0_12, %c0_13] : memref<8x128xf32, #tpu.memory_space<vmem>>, vector<8x128xf32>
    %c0_14 = arith.constant 0 : index
    %c0_15 = arith.constant 0 : index
    %14 = vector.load %arg9[%c0_14, %c0_15] : memref<8x128xf32, #tpu.memory_space<vmem>>, vector<8x128xf32>
    %c0_i32_16 = arith.constant 0 : i32
    %15 = arith.index_cast %c0_i32_16 : i32 to index
    %c0_17 = arith.constant 0 : index
    %c0_18 = arith.constant 0 : index
    %16 = vector.load %arg7[%15, %c0_17, %c0_18] : memref<8x8x512xf32, #tpu.memory_space<vmem>>, vector<1x8x512xf32>
    %17 = vector.shape_cast %16 : vector<1x8x512xf32> to vector<8x512xf32>
    %18 = arith.truncf %13 : vector<8x128xf32> to vector<8x128xbf16>
    %cst_19 = arith.constant dense<0.000000e+00> : vector<8x512xf32>
    %19 = tpu.matmul %18, %12, %cst_19 {dimension_numbers = #tpu.dot_dimension_numbers<[1], [0], [0], [1], [0, 0, 1, 1], [], []>} : vector<8x128xbf16>, vector<128x512xbf16>, vector<8x512xf32> -> vector<8x512xf32>
    %20 = arith.addf %17, %19 : vector<8x512xf32>
    %21 = vector.extract_strided_slice %20 {offsets = [0, 0], sizes = [8, 128], strides = [1, 1]} : vector<8x512xf32> to vector<8x128xf32>
    %cst_20 = arith.constant 5.000000e-01 : f32
    %22 = vector.broadcast %cst_20 : f32 to vector<8x128xf32>
    %23 = arith.mulf %22, %21 : vector<8x128xf32>
    %24 = math.tanh %23 : vector<8x128xf32>
    %cst_21 = arith.constant 5.000000e-01 : f32
    %25 = vector.broadcast %cst_21 : f32 to vector<8x128xf32>
    %26 = arith.mulf %25, %24 : vector<8x128xf32>
    %cst_22 = arith.constant 5.000000e-01 : f32
    %27 = vector.broadcast %cst_22 : f32 to vector<8x128xf32>
    %28 = arith.addf %26, %27 : vector<8x128xf32>
    %29 = vector.extract_strided_slice %20 {offsets = [0, 128], sizes = [8, 128], strides = [1, 1]} : vector<8x512xf32> to vector<8x128xf32>
    %cst_23 = arith.constant 5.000000e-01 : f32
    %30 = vector.broadcast %cst_23 : f32 to vector<8x128xf32>
    %31 = arith.mulf %30, %29 : vector<8x128xf32>
    %32 = math.tanh %31 : vector<8x128xf32>
    %cst_24 = arith.constant 5.000000e-01 : f32
    %33 = vector.broadcast %cst_24 : f32 to vector<8x128xf32>
    %34 = arith.mulf %33, %32 : vector<8x128xf32>
    %cst_25 = arith.constant 5.000000e-01 : f32
    %35 = vector.broadcast %cst_25 : f32 to vector<8x128xf32>
    %36 = arith.addf %34, %35 : vector<8x128xf32>
    %37 = vector.extract_strided_slice %20 {offsets = [0, 256], sizes = [8, 128], strides = [1, 1]} : vector<8x512xf32> to vector<8x128xf32>
    %38 = math.tanh %37 : vector<8x128xf32>
    %39 = vector.extract_strided_slice %20 {offsets = [0, 384], sizes = [8, 128], strides = [1, 1]} : vector<8x512xf32> to vector<8x128xf32>
    %cst_26 = arith.constant 5.000000e-01 : f32
    %40 = vector.broadcast %cst_26 : f32 to vector<8x128xf32>
    %41 = arith.mulf %40, %39 : vector<8x128xf32>
    %42 = math.tanh %41 : vector<8x128xf32>
    %cst_27 = arith.constant 5.000000e-01 : f32
    %43 = vector.broadcast %cst_27 : f32 to vector<8x128xf32>
    %44 = arith.mulf %43, %42 : vector<8x128xf32>
    %cst_28 = arith.constant 5.000000e-01 : f32
    %45 = vector.broadcast %cst_28 : f32 to vector<8x128xf32>
    %46 = arith.addf %44, %45 : vector<8x128xf32>
    %47 = arith.mulf %36, %14 : vector<8x128xf32>
    %48 = arith.mulf %28, %38 : vector<8x128xf32>
    %49 = arith.addf %47, %48 : vector<8x128xf32>
    %50 = math.tanh %49 : vector<8x128xf32>
    %51 = arith.mulf %46, %50 : vector<8x128xf32>
    %52 = arith.truncf %51 : vector<8x128xf32> to vector<8x128xbf16>
    %53 = arith.index_cast %c0_i32_16 : i32 to index
    %c0_29 = arith.constant 0 : index
    %c0_30 = arith.constant 0 : index
    %54 = vector.load %arg6[%53, %c0_29, %c0_30] : memref<8x8x128xbf16, #tpu.memory_space<vmem>>, vector<1x8x128xbf16>
    %55 = vector.shape_cast %54 : vector<1x8x128xbf16> to vector<8x128xbf16>
    %56 = vector.shape_cast %52 : vector<8x128xbf16> to vector<1x8x128xbf16>
    tpu.vector_store %arg6[%53, %c0_29, %c0_30], %56 {strides = array<i32>} : memref<8x8x128xbf16, #tpu.memory_space<vmem>>, vector<1x8x128xbf16>,
    %c1_i32 = arith.constant 1 : i32
    %57 = arith.index_cast %c1_i32 : i32 to index
    %c0_31 = arith.constant 0 : index
    %c0_32 = arith.constant 0 : index
    %58 = vector.load %arg7[%57, %c0_31, %c0_32] : memref<8x8x512xf32, #tpu.memory_space<vmem>>, vector<1x8x512xf32>
    %59 = vector.shape_cast %58 : vector<1x8x512xf32> to vector<8x512xf32>
    %60 = arith.truncf %51 : vector<8x128xf32> to vector<8x128xbf16>
    %cst_33 = arith.constant dense<0.000000e+00> : vector<8x512xf32>
    %61 = tpu.matmul %60, %12, %cst_33 {dimension_numbers = #tpu.dot_dimension_numbers<[1], [0], [0], [1], [0, 0, 1, 1], [], []>} : vector<8x128xbf16>, vector<128x512xbf16>, vector<8x512xf32> -> vector<8x512xf32>
    %62 = arith.addf %59, %61 : vector<8x512xf32>
    %63 = vector.extract_strided_slice %62 {offsets = [0, 0], sizes = [8, 128], strides = [1, 1]} : vector<8x512xf32> to vector<8x128xf32>
    %cst_34 = arith.constant 5.000000e-01 : f32
    %64 = vector.broadcast %cst_34 : f32 to vector<8x128xf32>
    %65 = arith.mulf %64, %63 : vector<8x128xf32>
    %66 = math.tanh %65 : vector<8x128xf32>
    %cst_35 = arith.constant 5.000000e-01 : f32
    %67 = vector.broadcast %cst_35 : f32 to vector<8x128xf32>
    %68 = arith.mulf %67, %66 : vector<8x128xf32>
    %cst_36 = arith.constant 5.000000e-01 : f32
    %69 = vector.broadcast %cst_36 : f32 to vector<8x128xf32>
    %70 = arith.addf %68, %69 : vector<8x128xf32>
    %71 = vector.extract_strided_slice %62 {offsets = [0, 128], sizes = [8, 128], strides = [1, 1]} : vector<8x512xf32> to vector<8x128xf32>
    %cst_37 = arith.constant 5.000000e-01 : f32
    %72 = vector.broadcast %cst_37 : f32 to vector<8x128xf32>
    %73 = arith.mulf %72, %71 : vector<8x128xf32>
    %74 = math.tanh %73 : vector<8x128xf32>
    %cst_38 = arith.constant 5.000000e-01 : f32
    %75 = vector.broadcast %cst_38 : f32 to vector<8x128xf32>
    %76 = arith.mulf %75, %74 : vector<8x128xf32>
    %cst_39 = arith.constant 5.000000e-01 : f32
    %77 = vector.broadcast %cst_39 : f32 to vector<8x128xf32>
    %78 = arith.addf %76, %77 : vector<8x128xf32>
    %79 = vector.extract_strided_slice %62 {offsets = [0, 256], sizes = [8, 128], strides = [1, 1]} : vector<8x512xf32> to vector<8x128xf32>
    %80 = math.tanh %79 : vector<8x128xf32>
    %81 = vector.extract_strided_slice %62 {offsets = [0, 384], sizes = [8, 128], strides = [1, 1]} : vector<8x512xf32> to vector<8x128xf32>
    %cst_40 = arith.constant 5.000000e-01 : f32
    %82 = vector.broadcast %cst_40 : f32 to vector<8x128xf32>
    %83 = arith.mulf %82, %81 : vector<8x128xf32>
    %84 = math.tanh %83 : vector<8x128xf32>
    %cst_41 = arith.constant 5.000000e-01 : f32
    %85 = vector.broadcast %cst_41 : f32 to vector<8x128xf32>
    %86 = arith.mulf %85, %84 : vector<8x128xf32>
    %cst_42 = arith.constant 5.000000e-01 : f32
    %87 = vector.broadcast %cst_42 : f32 to vector<8x128xf32>
    %88 = arith.addf %86, %87 : vector<8x128xf32>
    %89 = arith.mulf %78, %49 : vector<8x128xf32>
    %90 = arith.mulf %70, %80 : vector<8x128xf32>
    %91 = arith.addf %89, %90 : vector<8x128xf32>
    %92 = math.tanh %91 : vector<8x128xf32>
    %93 = arith.mulf %88, %92 : vector<8x128xf32>
    %94 = arith.truncf %93 : vector<8x128xf32> to vector<8x128xbf16>
    %95 = arith.index_cast %c1_i32 : i32 to index
    %c0_43 = arith.constant 0 : index
    %c0_44 = arith.constant 0 : index
    %96 = vector.load %arg6[%95, %c0_43, %c0_44] : memref<8x8x128xbf16, #tpu.memory_space<vmem>>, vector<1x8x128xbf16>
    %97 = vector.shape_cast %96 : vector<1x8x128xbf16> to vector<8x128xbf16>
    %98 = vector.shape_cast %94 : vector<8x128xbf16> to vector<1x8x128xbf16>
    tpu.vector_store %arg6[%95, %c0_43, %c0_44], %98 {strides = array<i32>} : memref<8x8x128xbf16, #tpu.memory_space<vmem>>, vector<1x8x128xbf16>,
    %c2_i32 = arith.constant 2 : i32
    %99 = arith.index_cast %c2_i32 : i32 to index
    %c0_45 = arith.constant 0 : index
    %c0_46 = arith.constant 0 : index
    %100 = vector.load %arg7[%99, %c0_45, %c0_46] : memref<8x8x512xf32, #tpu.memory_space<vmem>>, vector<1x8x512xf32>
    %101 = vector.shape_cast %100 : vector<1x8x512xf32> to vector<8x512xf32>
    %102 = arith.truncf %93 : vector<8x128xf32> to vector<8x128xbf16>
    %cst_47 = arith.constant dense<0.000000e+00> : vector<8x512xf32>
    %103 = tpu.matmul %102, %12, %cst_47 {dimension_numbers = #tpu.dot_dimension_numbers<[1], [0], [0], [1], [0, 0, 1, 1], [], []>} : vector<8x128xbf16>, vector<128x512xbf16>, vector<8x512xf32> -> vector<8x512xf32>
    %104 = arith.addf %101, %103 : vector<8x512xf32>
    %105 = vector.extract_strided_slice %104 {offsets = [0, 0], sizes = [8, 128], strides = [1, 1]} : vector<8x512xf32> to vector<8x128xf32>
    %cst_48 = arith.constant 5.000000e-01 : f32
    %106 = vector.broadcast %cst_48 : f32 to vector<8x128xf32>
    %107 = arith.mulf %106, %105 : vector<8x128xf32>
    %108 = math.tanh %107 : vector<8x128xf32>
    %cst_49 = arith.constant 5.000000e-01 : f32
    %109 = vector.broadcast %cst_49 : f32 to vector<8x128xf32>
    %110 = arith.mulf %109, %108 : vector<8x128xf32>
    %cst_50 = arith.constant 5.000000e-01 : f32
    %111 = vector.broadcast %cst_50 : f32 to vector<8x128xf32>
    %112 = arith.addf %110, %111 : vector<8x128xf32>
    %113 = vector.extract_strided_slice %104 {offsets = [0, 128], sizes = [8, 128], strides = [1, 1]} : vector<8x512xf32> to vector<8x128xf32>
    %cst_51 = arith.constant 5.000000e-01 : f32
    %114 = vector.broadcast %cst_51 : f32 to vector<8x128xf32>
    %115 = arith.mulf %114, %113 : vector<8x128xf32>
    %116 = math.tanh %115 : vector<8x128xf32>
    %cst_52 = arith.constant 5.000000e-01 : f32
    %117 = vector.broadcast %cst_52 : f32 to vector<8x128xf32>
    %118 = arith.mulf %117, %116 : vector<8x128xf32>
    %cst_53 = arith.constant 5.000000e-01 : f32
    %119 = vector.broadcast %cst_53 : f32 to vector<8x128xf32>
    %120 = arith.addf %118, %119 : vector<8x128xf32>
    %121 = vector.extract_strided_slice %104 {offsets = [0, 256], sizes = [8, 128], strides = [1, 1]} : vector<8x512xf32> to vector<8x128xf32>
    %122 = math.tanh %121 : vector<8x128xf32>
    %123 = vector.extract_strided_slice %104 {offsets = [0, 384], sizes = [8, 128], strides = [1, 1]} : vector<8x512xf32> to vector<8x128xf32>
    %cst_54 = arith.constant 5.000000e-01 : f32
    %124 = vector.broadcast %cst_54 : f32 to vector<8x128xf32>
    %125 = arith.mulf %124, %123 : vector<8x128xf32>
    %126 = math.tanh %125 : vector<8x128xf32>
    %cst_55 = arith.constant 5.000000e-01 : f32
    %127 = vector.broadcast %cst_55 : f32 to vector<8x128xf32>
    %128 = arith.mulf %127, %126 : vector<8x128xf32>
    %cst_56 = arith.constant 5.000000e-01 : f32
    %129 = vector.broadcast %cst_56 : f32 to vector<8x128xf32>
    %130 = arith.addf %128, %129 : vector<8x128xf32>
    %131 = arith.mulf %120, %91 : vector<8x128xf32>
    %132 = arith.mulf %112, %122 : vector<8x128xf32>
    %133 = arith.addf %131, %132 : vector<8x128xf32>
    %134 = math.tanh %133 : vector<8x128xf32>
    %135 = arith.mulf %130, %134 : vector<8x128xf32>
    %136 = arith.truncf %135 : vector<8x128xf32> to vector<8x128xbf16>
    %137 = arith.index_cast %c2_i32 : i32 to index
    %c0_57 = arith.constant 0 : index
    %c0_58 = arith.constant 0 : index
    %138 = vector.load %arg6[%137, %c0_57, %c0_58] : memref<8x8x128xbf16, #tpu.memory_space<vmem>>, vector<1x8x128xbf16>
    %139 = vector.shape_cast %138 : vector<1x8x128xbf16> to vector<8x128xbf16>
    %140 = vector.shape_cast %136 : vector<8x128xbf16> to vector<1x8x128xbf16>
    tpu.vector_store %arg6[%137, %c0_57, %c0_58], %140 {strides = array<i32>} : memref<8x8x128xbf16, #tpu.memory_space<vmem>>, vector<1x8x128xbf16>,
    %c3_i32 = arith.constant 3 : i32
    %141 = arith.index_cast %c3_i32 : i32 to index
    %c0_59 = arith.constant 0 : index
    %c0_60 = arith.constant 0 : index
    %142 = vector.load %arg7[%141, %c0_59, %c0_60] : memref<8x8x512xf32, #tpu.memory_space<vmem>>, vector<1x8x512xf32>
    %143 = vector.shape_cast %142 : vector<1x8x512xf32> to vector<8x512xf32>
    %144 = arith.truncf %135 : vector<8x128xf32> to vector<8x128xbf16>
    %cst_61 = arith.constant dense<0.000000e+00> : vector<8x512xf32>
    %145 = tpu.matmul %144, %12, %cst_61 {dimension_numbers = #tpu.dot_dimension_numbers<[1], [0], [0], [1], [0, 0, 1, 1], [], []>} : vector<8x128xbf16>, vector<128x512xbf16>, vector<8x512xf32> -> vector<8x512xf32>
    %146 = arith.addf %143, %145 : vector<8x512xf32>
    %147 = vector.extract_strided_slice %146 {offsets = [0, 0], sizes = [8, 128], strides = [1, 1]} : vector<8x512xf32> to vector<8x128xf32>
    %cst_62 = arith.constant 5.000000e-01 : f32
    %148 = vector.broadcast %cst_62 : f32 to vector<8x128xf32>
    %149 = arith.mulf %148, %147 : vector<8x128xf32>
    %150 = math.tanh %149 : vector<8x128xf32>
    %cst_63 = arith.constant 5.000000e-01 : f32
    %151 = vector.broadcast %cst_63 : f32 to vector<8x128xf32>
    %152 = arith.mulf %151, %150 : vector<8x128xf32>
    %cst_64 = arith.constant 5.000000e-01 : f32
    %153 = vector.broadcast %cst_64 : f32 to vector<8x128xf32>
    %154 = arith.addf %152, %153 : vector<8x128xf32>
    %155 = vector.extract_strided_slice %146 {offsets = [0, 128], sizes = [8, 128], strides = [1, 1]} : vector<8x512xf32> to vector<8x128xf32>
    %cst_65 = arith.constant 5.000000e-01 : f32
    %156 = vector.broadcast %cst_65 : f32 to vector<8x128xf32>
    %157 = arith.mulf %156, %155 : vector<8x128xf32>
    %158 = math.tanh %157 : vector<8x128xf32>
    %cst_66 = arith.constant 5.000000e-01 : f32
    %159 = vector.broadcast %cst_66 : f32 to vector<8x128xf32>
    %160 = arith.mulf %159, %158 : vector<8x128xf32>
    %cst_67 = arith.constant 5.000000e-01 : f32
    %161 = vector.broadcast %cst_67 : f32 to vector<8x128xf32>
    %162 = arith.addf %160, %161 : vector<8x128xf32>
    %163 = vector.extract_strided_slice %146 {offsets = [0, 256], sizes = [8, 128], strides = [1, 1]} : vector<8x512xf32> to vector<8x128xf32>
    %164 = math.tanh %163 : vector<8x128xf32>
    %165 = vector.extract_strided_slice %146 {offsets = [0, 384], sizes = [8, 128], strides = [1, 1]} : vector<8x512xf32> to vector<8x128xf32>
    %cst_68 = arith.constant 5.000000e-01 : f32
    %166 = vector.broadcast %cst_68 : f32 to vector<8x128xf32>
    %167 = arith.mulf %166, %165 : vector<8x128xf32>
    %168 = math.tanh %167 : vector<8x128xf32>
    %cst_69 = arith.constant 5.000000e-01 : f32
    %169 = vector.broadcast %cst_69 : f32 to vector<8x128xf32>
    %170 = arith.mulf %169, %168 : vector<8x128xf32>
    %cst_70 = arith.constant 5.000000e-01 : f32
    %171 = vector.broadcast %cst_70 : f32 to vector<8x128xf32>
    %172 = arith.addf %170, %171 : vector<8x128xf32>
    %173 = arith.mulf %162, %133 : vector<8x128xf32>
    %174 = arith.mulf %154, %164 : vector<8x128xf32>
    %175 = arith.addf %173, %174 : vector<8x128xf32>
    %176 = math.tanh %175 : vector<8x128xf32>
    %177 = arith.mulf %172, %176 : vector<8x128xf32>
    %178 = arith.truncf %177 : vector<8x128xf32> to vector<8x128xbf16>
    %179 = arith.index_cast %c3_i32 : i32 to index
    %c0_71 = arith.constant 0 : index
    %c0_72 = arith.constant 0 : index
    %180 = vector.load %arg6[%179, %c0_71, %c0_72] : memref<8x8x128xbf16, #tpu.memory_space<vmem>>, vector<1x8x128xbf16>
    %181 = vector.shape_cast %180 : vector<1x8x128xbf16> to vector<8x128xbf16>
    %182 = vector.shape_cast %178 : vector<8x128xbf16> to vector<1x8x128xbf16>
    tpu.vector_store %arg6[%179, %c0_71, %c0_72], %182 {strides = array<i32>} : memref<8x8x128xbf16, #tpu.memory_space<vmem>>, vector<1x8x128xbf16>,
    %c4_i32 = arith.constant 4 : i32
    %183 = arith.index_cast %c4_i32 : i32 to index
    %c0_73 = arith.constant 0 : index
    %c0_74 = arith.constant 0 : index
    %184 = vector.load %arg7[%183, %c0_73, %c0_74] : memref<8x8x512xf32, #tpu.memory_space<vmem>>, vector<1x8x512xf32>
    %185 = vector.shape_cast %184 : vector<1x8x512xf32> to vector<8x512xf32>
    %186 = arith.truncf %177 : vector<8x128xf32> to vector<8x128xbf16>
    %cst_75 = arith.constant dense<0.000000e+00> : vector<8x512xf32>
    %187 = tpu.matmul %186, %12, %cst_75 {dimension_numbers = #tpu.dot_dimension_numbers<[1], [0], [0], [1], [0, 0, 1, 1], [], []>} : vector<8x128xbf16>, vector<128x512xbf16>, vector<8x512xf32> -> vector<8x512xf32>
    %188 = arith.addf %185, %187 : vector<8x512xf32>
    %189 = vector.extract_strided_slice %188 {offsets = [0, 0], sizes = [8, 128], strides = [1, 1]} : vector<8x512xf32> to vector<8x128xf32>
    %cst_76 = arith.constant 5.000000e-01 : f32
    %190 = vector.broadcast %cst_76 : f32 to vector<8x128xf32>
    %191 = arith.mulf %190, %189 : vector<8x128xf32>
    %192 = math.tanh %191 : vector<8x128xf32>
    %cst_77 = arith.constant 5.000000e-01 : f32
    %193 = vector.broadcast %cst_77 : f32 to vector<8x128xf32>
    %194 = arith.mulf %193, %192 : vector<8x128xf32>
    %cst_78 = arith.constant 5.000000e-01 : f32
    %195 = vector.broadcast %cst_78 : f32 to vector<8x128xf32>
    %196 = arith.addf %194, %195 : vector<8x128xf32>
    %197 = vector.extract_strided_slice %188 {offsets = [0, 128], sizes = [8, 128], strides = [1, 1]} : vector<8x512xf32> to vector<8x128xf32>
    %cst_79 = arith.constant 5.000000e-01 : f32
    %198 = vector.broadcast %cst_79 : f32 to vector<8x128xf32>
    %199 = arith.mulf %198, %197 : vector<8x128xf32>
    %200 = math.tanh %199 : vector<8x128xf32>
    %cst_80 = arith.constant 5.000000e-01 : f32
    %201 = vector.broadcast %cst_80 : f32 to vector<8x128xf32>
    %202 = arith.mulf %201, %200 : vector<8x128xf32>
    %cst_81 = arith.constant 5.000000e-01 : f32
    %203 = vector.broadcast %cst_81 : f32 to vector<8x128xf32>
    %204 = arith.addf %202, %203 : vector<8x128xf32>
    %205 = vector.extract_strided_slice %188 {offsets = [0, 256], sizes = [8, 128], strides = [1, 1]} : vector<8x512xf32> to vector<8x128xf32>
    %206 = math.tanh %205 : vector<8x128xf32>
    %207 = vector.extract_strided_slice %188 {offsets = [0, 384], sizes = [8, 128], strides = [1, 1]} : vector<8x512xf32> to vector<8x128xf32>
    %cst_82 = arith.constant 5.000000e-01 : f32
    %208 = vector.broadcast %cst_82 : f32 to vector<8x128xf32>
    %209 = arith.mulf %208, %207 : vector<8x128xf32>
    %210 = math.tanh %209 : vector<8x128xf32>
    %cst_83 = arith.constant 5.000000e-01 : f32
    %211 = vector.broadcast %cst_83 : f32 to vector<8x128xf32>
    %212 = arith.mulf %211, %210 : vector<8x128xf32>
    %cst_84 = arith.constant 5.000000e-01 : f32
    %213 = vector.broadcast %cst_84 : f32 to vector<8x128xf32>
    %214 = arith.addf %212, %213 : vector<8x128xf32>
    %215 = arith.mulf %204, %175 : vector<8x128xf32>
    %216 = arith.mulf %196, %206 : vector<8x128xf32>
    %217 = arith.addf %215, %216 : vector<8x128xf32>
    %218 = math.tanh %217 : vector<8x128xf32>
    %219 = arith.mulf %214, %218 : vector<8x128xf32>
    %220 = arith.truncf %219 : vector<8x128xf32> to vector<8x128xbf16>
    %221 = arith.index_cast %c4_i32 : i32 to index
    %c0_85 = arith.constant 0 : index
    %c0_86 = arith.constant 0 : index
    %222 = vector.load %arg6[%221, %c0_85, %c0_86] : memref<8x8x128xbf16, #tpu.memory_space<vmem>>, vector<1x8x128xbf16>
    %223 = vector.shape_cast %222 : vector<1x8x128xbf16> to vector<8x128xbf16>
    %224 = vector.shape_cast %220 : vector<8x128xbf16> to vector<1x8x128xbf16>
    tpu.vector_store %arg6[%221, %c0_85, %c0_86], %224 {strides = array<i32>} : memref<8x8x128xbf16, #tpu.memory_space<vmem>>, vector<1x8x128xbf16>,
    %c5_i32 = arith.constant 5 : i32
    %225 = arith.index_cast %c5_i32 : i32 to index
    %c0_87 = arith.constant 0 : index
    %c0_88 = arith.constant 0 : index
    %226 = vector.load %arg7[%225, %c0_87, %c0_88] : memref<8x8x512xf32, #tpu.memory_space<vmem>>, vector<1x8x512xf32>
    %227 = vector.shape_cast %226 : vector<1x8x512xf32> to vector<8x512xf32>
    %228 = arith.truncf %219 : vector<8x128xf32> to vector<8x128xbf16>
    %cst_89 = arith.constant dense<0.000000e+00> : vector<8x512xf32>
    %229 = tpu.matmul %228, %12, %cst_89 {dimension_numbers = #tpu.dot_dimension_numbers<[1], [0], [0], [1], [0, 0, 1, 1], [], []>} : vector<8x128xbf16>, vector<128x512xbf16>, vector<8x512xf32> -> vector<8x512xf32>
    %230 = arith.addf %227, %229 : vector<8x512xf32>
    %231 = vector.extract_strided_slice %230 {offsets = [0, 0], sizes = [8, 128], strides = [1, 1]} : vector<8x512xf32> to vector<8x128xf32>
    %cst_90 = arith.constant 5.000000e-01 : f32
    %232 = vector.broadcast %cst_90 : f32 to vector<8x128xf32>
    %233 = arith.mulf %232, %231 : vector<8x128xf32>
    %234 = math.tanh %233 : vector<8x128xf32>
    %cst_91 = arith.constant 5.000000e-01 : f32
    %235 = vector.broadcast %cst_91 : f32 to vector<8x128xf32>
    %236 = arith.mulf %235, %234 : vector<8x128xf32>
    %cst_92 = arith.constant 5.000000e-01 : f32
    %237 = vector.broadcast %cst_92 : f32 to vector<8x128xf32>
    %238 = arith.addf %236, %237 : vector<8x128xf32>
    %239 = vector.extract_strided_slice %230 {offsets = [0, 128], sizes = [8, 128], strides = [1, 1]} : vector<8x512xf32> to vector<8x128xf32>
    %cst_93 = arith.constant 5.000000e-01 : f32
    %240 = vector.broadcast %cst_93 : f32 to vector<8x128xf32>
    %241 = arith.mulf %240, %239 : vector<8x128xf32>
    %242 = math.tanh %241 : vector<8x128xf32>
    %cst_94 = arith.constant 5.000000e-01 : f32
    %243 = vector.broadcast %cst_94 : f32 to vector<8x128xf32>
    %244 = arith.mulf %243, %242 : vector<8x128xf32>
    %cst_95 = arith.constant 5.000000e-01 : f32
    %245 = vector.broadcast %cst_95 : f32 to vector<8x128xf32>
    %246 = arith.addf %244, %245 : vector<8x128xf32>
    %247 = vector.extract_strided_slice %230 {offsets = [0, 256], sizes = [8, 128], strides = [1, 1]} : vector<8x512xf32> to vector<8x128xf32>
    %248 = math.tanh %247 : vector<8x128xf32>
    %249 = vector.extract_strided_slice %230 {offsets = [0, 384], sizes = [8, 128], strides = [1, 1]} : vector<8x512xf32> to vector<8x128xf32>
    %cst_96 = arith.constant 5.000000e-01 : f32
    %250 = vector.broadcast %cst_96 : f32 to vector<8x128xf32>
    %251 = arith.mulf %250, %249 : vector<8x128xf32>
    %252 = math.tanh %251 : vector<8x128xf32>
    %cst_97 = arith.constant 5.000000e-01 : f32
    %253 = vector.broadcast %cst_97 : f32 to vector<8x128xf32>
    %254 = arith.mulf %253, %252 : vector<8x128xf32>
    %cst_98 = arith.constant 5.000000e-01 : f32
    %255 = vector.broadcast %cst_98 : f32 to vector<8x128xf32>
    %256 = arith.addf %254, %255 : vector<8x128xf32>
    %257 = arith.mulf %246, %217 : vector<8x128xf32>
    %258 = arith.mulf %238, %248 : vector<8x128xf32>
    %259 = arith.addf %257, %258 : vector<8x128xf32>
    %260 = math.tanh %259 : vector<8x128xf32>
    %261 = arith.mulf %256, %260 : vector<8x128xf32>
    %262 = arith.truncf %261 : vector<8x128xf32> to vector<8x128xbf16>
    %263 = arith.index_cast %c5_i32 : i32 to index
    %c0_99 = arith.constant 0 : index
    %c0_100 = arith.constant 0 : index
    %264 = vector.load %arg6[%263, %c0_99, %c0_100] : memref<8x8x128xbf16, #tpu.memory_space<vmem>>, vector<1x8x128xbf16>
    %265 = vector.shape_cast %264 : vector<1x8x128xbf16> to vector<8x128xbf16>
    %266 = vector.shape_cast %262 : vector<8x128xbf16> to vector<1x8x128xbf16>
    tpu.vector_store %arg6[%263, %c0_99, %c0_100], %266 {strides = array<i32>} : memref<8x8x128xbf16, #tpu.memory_space<vmem>>, vector<1x8x128xbf16>,
    %c6_i32 = arith.constant 6 : i32
    %267 = arith.index_cast %c6_i32 : i32 to index
    %c0_101 = arith.constant 0 : index
    %c0_102 = arith.constant 0 : index
    %268 = vector.load %arg7[%267, %c0_101, %c0_102] : memref<8x8x512xf32, #tpu.memory_space<vmem>>, vector<1x8x512xf32>
    %269 = vector.shape_cast %268 : vector<1x8x512xf32> to vector<8x512xf32>
    %270 = arith.truncf %261 : vector<8x128xf32> to vector<8x128xbf16>
    %cst_103 = arith.constant dense<0.000000e+00> : vector<8x512xf32>
    %271 = tpu.matmul %270, %12, %cst_103 {dimension_numbers = #tpu.dot_dimension_numbers<[1], [0], [0], [1], [0, 0, 1, 1], [], []>} : vector<8x128xbf16>, vector<128x512xbf16>, vector<8x512xf32> -> vector<8x512xf32>
    %272 = arith.addf %269, %271 : vector<8x512xf32>
    %273 = vector.extract_strided_slice %272 {offsets = [0, 0], sizes = [8, 128], strides = [1, 1]} : vector<8x512xf32> to vector<8x128xf32>
    %cst_104 = arith.constant 5.000000e-01 : f32
    %274 = vector.broadcast %cst_104 : f32 to vector<8x128xf32>
    %275 = arith.mulf %274, %273 : vector<8x128xf32>
    %276 = math.tanh %275 : vector<8x128xf32>
    %cst_105 = arith.constant 5.000000e-01 : f32
    %277 = vector.broadcast %cst_105 : f32 to vector<8x128xf32>
    %278 = arith.mulf %277, %276 : vector<8x128xf32>
    %cst_106 = arith.constant 5.000000e-01 : f32
    %279 = vector.broadcast %cst_106 : f32 to vector<8x128xf32>
    %280 = arith.addf %278, %279 : vector<8x128xf32>
    %281 = vector.extract_strided_slice %272 {offsets = [0, 128], sizes = [8, 128], strides = [1, 1]} : vector<8x512xf32> to vector<8x128xf32>
    %cst_107 = arith.constant 5.000000e-01 : f32
    %282 = vector.broadcast %cst_107 : f32 to vector<8x128xf32>
    %283 = arith.mulf %282, %281 : vector<8x128xf32>
    %284 = math.tanh %283 : vector<8x128xf32>
    %cst_108 = arith.constant 5.000000e-01 : f32
    %285 = vector.broadcast %cst_108 : f32 to vector<8x128xf32>
    %286 = arith.mulf %285, %284 : vector<8x128xf32>
    %cst_109 = arith.constant 5.000000e-01 : f32
    %287 = vector.broadcast %cst_109 : f32 to vector<8x128xf32>
    %288 = arith.addf %286, %287 : vector<8x128xf32>
    %289 = vector.extract_strided_slice %272 {offsets = [0, 256], sizes = [8, 128], strides = [1, 1]} : vector<8x512xf32> to vector<8x128xf32>
    %290 = math.tanh %289 : vector<8x128xf32>
    %291 = vector.extract_strided_slice %272 {offsets = [0, 384], sizes = [8, 128], strides = [1, 1]} : vector<8x512xf32> to vector<8x128xf32>
    %cst_110 = arith.constant 5.000000e-01 : f32
    %292 = vector.broadcast %cst_110 : f32 to vector<8x128xf32>
    %293 = arith.mulf %292, %291 : vector<8x128xf32>
    %294 = math.tanh %293 : vector<8x128xf32>
    %cst_111 = arith.constant 5.000000e-01 : f32
    %295 = vector.broadcast %cst_111 : f32 to vector<8x128xf32>
    %296 = arith.mulf %295, %294 : vector<8x128xf32>
    %cst_112 = arith.constant 5.000000e-01 : f32
    %297 = vector.broadcast %cst_112 : f32 to vector<8x128xf32>
    %298 = arith.addf %296, %297 : vector<8x128xf32>
    %299 = arith.mulf %288, %259 : vector<8x128xf32>
    %300 = arith.mulf %280, %290 : vector<8x128xf32>
    %301 = arith.addf %299, %300 : vector<8x128xf32>
    %302 = math.tanh %301 : vector<8x128xf32>
    %303 = arith.mulf %298, %302 : vector<8x128xf32>
    %304 = arith.truncf %303 : vector<8x128xf32> to vector<8x128xbf16>
    %305 = arith.index_cast %c6_i32 : i32 to index
    %c0_113 = arith.constant 0 : index
    %c0_114 = arith.constant 0 : index
    %306 = vector.load %arg6[%305, %c0_113, %c0_114] : memref<8x8x128xbf16, #tpu.memory_space<vmem>>, vector<1x8x128xbf16>
    %307 = vector.shape_cast %306 : vector<1x8x128xbf16> to vector<8x128xbf16>
    %308 = vector.shape_cast %304 : vector<8x128xbf16> to vector<1x8x128xbf16>
    tpu.vector_store %arg6[%305, %c0_113, %c0_114], %308 {strides = array<i32>} : memref<8x8x128xbf16, #tpu.memory_space<vmem>>, vector<1x8x128xbf16>,
    %c7_i32 = arith.constant 7 : i32
    %309 = arith.index_cast %c7_i32 : i32 to index
    %c0_115 = arith.constant 0 : index
    %c0_116 = arith.constant 0 : index
    %310 = vector.load %arg7[%309, %c0_115, %c0_116] : memref<8x8x512xf32, #tpu.memory_space<vmem>>, vector<1x8x512xf32>
    %311 = vector.shape_cast %310 : vector<1x8x512xf32> to vector<8x512xf32>
    %312 = arith.truncf %303 : vector<8x128xf32> to vector<8x128xbf16>
    %cst_117 = arith.constant dense<0.000000e+00> : vector<8x512xf32>
    %313 = tpu.matmul %312, %12, %cst_117 {dimension_numbers = #tpu.dot_dimension_numbers<[1], [0], [0], [1], [0, 0, 1, 1], [], []>} : vector<8x128xbf16>, vector<128x512xbf16>, vector<8x512xf32> -> vector<8x512xf32>
    %314 = arith.addf %311, %313 : vector<8x512xf32>
    %315 = vector.extract_strided_slice %314 {offsets = [0, 0], sizes = [8, 128], strides = [1, 1]} : vector<8x512xf32> to vector<8x128xf32>
    %cst_118 = arith.constant 5.000000e-01 : f32
    %316 = vector.broadcast %cst_118 : f32 to vector<8x128xf32>
    %317 = arith.mulf %316, %315 : vector<8x128xf32>
    %318 = math.tanh %317 : vector<8x128xf32>
    %cst_119 = arith.constant 5.000000e-01 : f32
    %319 = vector.broadcast %cst_119 : f32 to vector<8x128xf32>
    %320 = arith.mulf %319, %318 : vector<8x128xf32>
    %cst_120 = arith.constant 5.000000e-01 : f32
    %321 = vector.broadcast %cst_120 : f32 to vector<8x128xf32>
    %322 = arith.addf %320, %321 : vector<8x128xf32>
    %323 = vector.extract_strided_slice %314 {offsets = [0, 128], sizes = [8, 128], strides = [1, 1]} : vector<8x512xf32> to vector<8x128xf32>
    %cst_121 = arith.constant 5.000000e-01 : f32
    %324 = vector.broadcast %cst_121 : f32 to vector<8x128xf32>
    %325 = arith.mulf %324, %323 : vector<8x128xf32>
    %326 = math.tanh %325 : vector<8x128xf32>
    %cst_122 = arith.constant 5.000000e-01 : f32
    %327 = vector.broadcast %cst_122 : f32 to vector<8x128xf32>
    %328 = arith.mulf %327, %326 : vector<8x128xf32>
    %cst_123 = arith.constant 5.000000e-01 : f32
    %329 = vector.broadcast %cst_123 : f32 to vector<8x128xf32>
    %330 = arith.addf %328, %329 : vector<8x128xf32>
    %331 = vector.extract_strided_slice %314 {offsets = [0, 256], sizes = [8, 128], strides = [1, 1]} : vector<8x512xf32> to vector<8x128xf32>
    %332 = math.tanh %331 : vector<8x128xf32>
    %333 = vector.extract_strided_slice %314 {offsets = [0, 384], sizes = [8, 128], strides = [1, 1]} : vector<8x512xf32> to vector<8x128xf32>
    %cst_124 = arith.constant 5.000000e-01 : f32
    %334 = vector.broadcast %cst_124 : f32 to vector<8x128xf32>
    %335 = arith.mulf %334, %333 : vector<8x128xf32>
    %336 = math.tanh %335 : vector<8x128xf32>
    %cst_125 = arith.constant 5.000000e-01 : f32
    %337 = vector.broadcast %cst_125 : f32 to vector<8x128xf32>
    %338 = arith.mulf %337, %336 : vector<8x128xf32>
    %cst_126 = arith.constant 5.000000e-01 : f32
    %339 = vector.broadcast %cst_126 : f32 to vector<8x128xf32>
    %340 = arith.addf %338, %339 : vector<8x128xf32>
    %341 = arith.mulf %330, %301 : vector<8x128xf32>
    %342 = arith.mulf %322, %332 : vector<8x128xf32>
    %343 = arith.addf %341, %342 : vector<8x128xf32>
    %344 = math.tanh %343 : vector<8x128xf32>
    %345 = arith.mulf %340, %344 : vector<8x128xf32>
    %346 = arith.truncf %345 : vector<8x128xf32> to vector<8x128xbf16>
    %347 = arith.index_cast %c7_i32 : i32 to index
    %c0_127 = arith.constant 0 : index
    %c0_128 = arith.constant 0 : index
    %348 = vector.load %arg6[%347, %c0_127, %c0_128] : memref<8x8x128xbf16, #tpu.memory_space<vmem>>, vector<1x8x128xbf16>
    %349 = vector.shape_cast %348 : vector<1x8x128xbf16> to vector<8x128xbf16>
    %350 = vector.shape_cast %346 : vector<8x128xbf16> to vector<1x8x128xbf16>
    tpu.vector_store %arg6[%347, %c0_127, %c0_128], %350 {strides = array<i32>} : memref<8x8x128xbf16, #tpu.memory_space<vmem>>, vector<1x8x128xbf16>,
    %c8_i32 = arith.constant 8 : i32
    %c0_129 = arith.constant 0 : index
    %c0_130 = arith.constant 0 : index
    %351 = vector.load %arg8[%c0_129, %c0_130] : memref<8x128xf32, #tpu.memory_space<vmem>>, vector<8x128xf32>
    tpu.vector_store %arg8[%c0_129, %c0_130], %345 {strides = array<i32>} : memref<8x128xf32, #tpu.memory_space<vmem>>, vector<8x128xf32>,
    %c0_131 = arith.constant 0 : index
    %c0_132 = arith.constant 0 : index
    %352 = vector.load %arg9[%c0_131, %c0_132] : memref<8x128xf32, #tpu.memory_space<vmem>>, vector<8x128xf32>
    tpu.vector_store %arg9[%c0_131, %c0_132], %343 {strides = array<i32>} : memref<8x128xf32, #tpu.memory_space<vmem>>, vector<8x128xf32>,
    return
  }
  func.func @transform_0(%arg0: i32, %arg1: i32) -> (i32, i32, i32) {
    %c0_i32 = arith.constant 0 : i32
    %c0_i32_0 = arith.constant 0 : i32
    return %arg1, %arg0, %c0_i32 : i32, i32, i32
  }
  func.func @transform_1(%arg0: i32, %arg1: i32) -> (i32, i32) {
    %c0_i32 = arith.constant 0 : i32
    %c0_i32_0 = arith.constant 0 : i32
    %c0_i32_1 = arith.constant 0 : i32
    return %c0_i32, %c0_i32_0 : i32, i32
  }
  func.func @transform_2(%arg0: i32, %arg1: i32) -> (i32, i32) {
    %c0_i32 = arith.constant 0 : i32
    %c0_i32_0 = arith.constant 0 : i32
    %c0_i32_1 = arith.constant 0 : i32
    return %c0_i32, %c0_i32_0 : i32, i32
  }
  func.func @transform_3(%arg0: i32, %arg1: i32) -> (i32, i32) {
    %c0_i32 = arith.constant 0 : i32
    %c0_i32_0 = arith.constant 0 : i32
    %c0_i32_1 = arith.constant 0 : i32
    return %c0_i32, %c0_i32_0 : i32, i32
  }
  func.func @transform_4(%arg0: i32, %arg1: i32) -> (i32, i32, i32) {
    %c0_i32 = arith.constant 0 : i32
    %c0_i32_0 = arith.constant 0 : i32
    return %arg1, %arg0, %c0_i32 : i32, i32, i32
  }
}

</mosaic_0001>

<bundles_post_ra>
// kernel: tpu_custom_call.1
= control target key start
LH: loop header
LB: loop body
LE: loop exit
PB: predicated region body
PF: predicated region fallthrough
CT: control target
= control target key end

     0   :  { %9 = vsyncpa [#allocation6], 0  ;;  %s2403_s0 = inlined_call_operand.hbm [shape: bf16[8,8,128], index: 0, kind: input, shape index: {}]   ;;  %s2404_s1 = inlined_call_operand.hbm [shape: bf16[128,512], index: 1, kind: input, shape index: {}]   ;;  %s2405_s2 = inlined_call_operand.hbm [shape: f32[1,512], index: 2, kind: input, shape index: {}]   ;;  %s2406_s3 = inlined_call_operand.hbm [shape: bf16[128,512], index: 3, kind: input, shape index: {}]   ;;  %s2407_s4 = inlined_call_operand.hbm [shape: bf16[8,8,128], index: 4, kind: output, shape index: {}]  }
   0x1   :  { %10 = vsyncpa [#allocation9], 0 }
   0x2   :  { %11 = vsyncpa [#allocation12], 0  ;;  %s30_s17 = sshll.u32 %s2404_s1, 4  ;;  %s31_s17 = int_to_ptr.hbm [resolvable:$true] %s30_s17 }
   0x3   :  { %12 = vsyncpa [#allocation7], 0  ;;  %s1897_s18 = smov [#allocation8]   ;;  %s17_s22 = sshll.u32 %s2403_s0, 4  ;;  %s18_s22 = int_to_ptr.hbm [resolvable:$true] %s17_s22 }
   0x4   :  { %s32_s19 = sshll.u32 %s1897_s18, 4  ;;  %s1898_s23 = smov 256   ;;  %s33_s19 = int_to_ptr.vmem [resolvable:$true] %s32_s19 }
   0x5   :  { %s1899_s24 = smov 16   ;;  %s1900_s25 = smov [#allocation5]  }
   0x6   :  { %38 = dma.hbm_to_vmem [thread:$0]  %s31_s17, 4096, %s33_s19, [#allocation9], %s1898_s23, %s1898_s23, %s1899_s24  }
   0x7   :  { %s19_s26 = sshll.u32 %s1900_s25, 4  ;;  %s1901_s27 = smov 64   ;;  %s20_s26 = int_to_ptr.vmem [resolvable:$true] %s19_s26 }
   0x8   :  { %s1902_s28 = smov 4   ;;  %s44_s30 = sshll.u32 %s2405_s2, 4  ;;  %s45_s30 = int_to_ptr.hbm [resolvable:$true] %s44_s30 }
   0x9   :  { %25 = dma.hbm_to_vmem [thread:$0]  %s18_s22, 512, %s20_s26, [#allocation6], %s1901_s27, %s1901_s27, %s1902_s28  }
   0xa   :  { %s1903_s5 = smov [#allocation10]   ;;  %s54_s8 = sshll.u32 %s2406_s3, 4  ;;  %s55_s8 = int_to_ptr.hbm [resolvable:$true] %s54_s8 }
   0xb   :  { %s46_s0 = sshll.u32 %s1903_s5, 4  ;;  %s1904_s9 = smov [#allocation11]   ;;  %s47_s0 = int_to_ptr.vmem [resolvable:$true] %s46_s0 }
   0xc   :  { %49 = dma.hbm_to_vmem [thread:$0]  %s45_s30, 64, %s47_s0, [#allocation9]  }
   0xd   :  { %s56_s10 = sshll.u32 %s1904_s9, 4  ;;  %s57_s10 = int_to_ptr.vmem [resolvable:$true] %s56_s10 }
   0xe   :  { %62 = dma.hbm_to_vmem [thread:$0]  %s55_s8, 4096, %s57_s10, [#allocation12], %s1898_s23, %s1898_s23, %s1899_s24  }
   0xf   :  { %1889 = dma.done.wait [#allocation6], 512  }
  0x10   :  { %1890 = vsyncadd [#allocation6], 4294966784 }
  0x11   :  { %1891 = dma.done.wait [#allocation9], 4160  }
  0x12   :  { %1892 = vsyncadd [#allocation9], 4294963136 }
  0x13   :  { %1893 = dma.done.wait [#allocation12], 4096  }
  0x14   :  { %1894 = vsyncadd [#allocation12], 4294963200  ;;  %v1469_v0 = vld [vmem:[#allocation8 + $0xe0] sm:$0xf]  ;;  %v1645_v1 = vld [vmem:[#allocation8 + $0xec] sm:$0xf0] }
  0x15   :  { %v1643_v2 = vld [vmem:[#allocation8 + $0xe4] sm:$0xf]  ;;  %v1470_v3 = vor.u32 %v1645_v1, %v1469_v0  ;;  %v1471_v4 = vld [vmem:[#allocation8 + $0xf0] sm:$0xf0]  ;;  %v1477_v5 = vld [vmem:[#allocation8 + $0xe8] sm:$0xf] }
  0x16   :  { %v1646_v6 = vld [vmem:[#allocation8 + $0xf4] sm:$0xf0]  ;;  %v1474_v7 = vor.u32 %v1643_v2, %v1471_v4  ;;  %v1644_v9 = vld [vmem:[#allocation8 + $0xec] sm:$0xf]  ;;  %v1479_v10 = vld [vmem:[#allocation8 + $0xf8] sm:$0xf0] }
  0x17   :  { %v1478_v8 = vor.u32 %v1646_v6, %v1477_v5  ;;  %v1453_v11 = vld [vmem:[#allocation8 + $0xc0] sm:$0xf]  ;;  %319 = vmatpush.bf16.msra.mxu0 %v1470_v3  ;;  %v1482_v12 = vor.u32 %v1644_v9, %v1479_v10  ;;  %v1641_v13 = vld [vmem:[#allocation8 + $0xcc] sm:$0xf0]  ;;  %v1639_v14 = vld [vmem:[#allocation8 + $0xc4] sm:$0xf] }
  0x18   :  { %v1455_v15 = vld [vmem:[#allocation8 + $0xd0] sm:$0xf0]  ;;  %348 = vmatpush.bf16.msra.mxu1 %v1474_v7  ;;  %v1454_v16 = vor.u32 %v1641_v13, %v1453_v11  ;;  %v1461_v18 = vld [vmem:[#allocation8 + $0xc8] sm:$0xf]  ;;  %v1642_v19 = vld [vmem:[#allocation8 + $0xd4] sm:$0xf0] }
  0x19   :  { %377 = vmatpush.bf16.msra.mxu2 %v1478_v8  ;;  %v1458_v17 = vor.u32 %v1639_v14, %v1455_v15  ;;  %v1640_v20 = vld [vmem:[#allocation8 + $0xcc] sm:$0xf]  ;;  %406 = vmatpush.bf16.msra.mxu3 %v1482_v12  ;;  %v1462_v21 = vor.u32 %v1642_v19, %v1461_v18  ;;  %v1463_v22 = vld [vmem:[#allocation8 + $0xd8] sm:$0xf0]  ;;  %v1437_v23 = vld [vmem:[#allocation8 + $0xa0] sm:$0xf] }
  0x1a   :  { %v1637_v24 = vld [vmem:[#allocation8 + $0xac] sm:$0xf0]  ;;  %v1466_v25 = vor.u32 %v1640_v20, %v1463_v22  ;;  %v1635_v26 = vld [vmem:[#allocation8 + $0xa4] sm:$0xf]  ;;  %v1439_v27 = vld [vmem:[#allocation8 + $0xb0] sm:$0xf0] }
  0x1b   :  { %v1445_v28 = vld [vmem:[#allocation8 + $0xa8] sm:$0xf]  ;;  %320 = vmatpush.bf16.msra.mxu0 %v1454_v16  ;;  %v1438_v29 = vor.u32 %v1637_v24, %v1437_v23  ;;  %v1638_v30 = vld [vmem:[#allocation8 + $0xb4] sm:$0xf0]  ;;  %v1636_v31 = vld [vmem:[#allocation8 + $0xac] sm:$0xf]  ;;  %v1442_v33 = vor.u32 %v1635_v26, %v1439_v27 }
  0x1c   :  { %v1447_v32 = vld [vmem:[#allocation8 + $0xb8] sm:$0xf0]  ;;  %349 = vmatpush.bf16.msra.mxu1 %v1458_v17  ;;  %v1446_v34 = vor.u32 %v1638_v30, %v1445_v28  ;;  %v1421_v35 = vld [vmem:[#allocation8 + $0x80] sm:$0xf]  ;;  %v1633_v36 = vld [vmem:[#allocation8 + $0x8c] sm:$0xf0] }
  0x1d   :  { %378 = vmatpush.bf16.msra.mxu2 %v1462_v21  ;;  %v1631_v37 = vld [vmem:[#allocation8 + $0x84] sm:$0xf]  ;;  %407 = vmatpush.bf16.msra.mxu3 %v1466_v25  ;;  %v1450_v38 = vor.u32 %v1636_v31, %v1447_v32  ;;  %v1423_v39 = vld [vmem:[#allocation8 + $0x90] sm:$0xf0]  ;;  %v1429_v40 = vld [vmem:[#allocation8 + $0x88] sm:$0xf]  ;;  %v1422_v44 = vor.u32 %v1633_v36, %v1421_v35 }
  0x1e   :  { %v1634_v41 = vld [vmem:[#allocation8 + $0x94] sm:$0xf0]  ;;  %v1632_v42 = vld [vmem:[#allocation8 + $0x8c] sm:$0xf]  ;;  %v1431_v43 = vld [vmem:[#allocation8 + $0x98] sm:$0xf0]  ;;  %v1426_v45 = vor.u32 %v1631_v37, %v1423_v39 }
  0x1f   :  { %321 = vmatpush.bf16.msra.mxu0 %v1438_v29  ;;  %v1430_v46 = vor.u32 %v1634_v41, %v1429_v40  ;;  %v1405_v47 = vld [vmem:[#allocation8 + $0x60] sm:$0xf]  ;;  %v1629_v48 = vld [vmem:[#allocation8 + $0x6c] sm:$0xf0]  ;;  %v1627_v49 = vld [vmem:[#allocation8 + $0x64] sm:$0xf]  ;;  %v1434_v50 = vor.u32 %v1632_v42, %v1431_v43 }
  0x20   :  { %350 = vmatpush.bf16.msra.mxu1 %v1442_v33  ;;  %v1407_v51 = vld [vmem:[#allocation8 + $0x70] sm:$0xf0]  ;;  %v1413_v52 = vld [vmem:[#allocation8 + $0x68] sm:$0xf]  ;;  %v1630_v53 = vld [vmem:[#allocation8 + $0x74] sm:$0xf0]  ;;  %v1406_v56 = vor.u32 %v1629_v48, %v1405_v47 }
  0x21   :  { %379 = vmatpush.bf16.msra.mxu2 %v1446_v34  ;;  %408 = vmatpush.bf16.msra.mxu3 %v1450_v38  ;;  %v1628_v54 = vld [vmem:[#allocation8 + $0x6c] sm:$0xf]  ;;  %v1415_v55 = vld [vmem:[#allocation8 + $0x78] sm:$0xf0]  ;;  %v1410_v57 = vor.u32 %v1627_v49, %v1407_v51  ;;  %v1414_v58 = vor.u32 %v1630_v53, %v1413_v52  ;;  %v1389_v59 = vld [vmem:[#allocation8 + $0x40] sm:$0xf] }
  0x22   :  { %v1625_v60 = vld [vmem:[#allocation8 + $0x4c] sm:$0xf0]  ;;  %v1623_v61 = vld [vmem:[#allocation8 + $0x44] sm:$0xf]  ;;  %v1418_v62 = vor.u32 %v1628_v54, %v1415_v55  ;;  %v1391_v63 = vld [vmem:[#allocation8 + $0x50] sm:$0xf0] }
  0x23   :  { %322 = vmatpush.bf16.msra.mxu0 %v1422_v44  ;;  %v1397_v0 = vld [vmem:[#allocation8 + $0x48] sm:$0xf]  ;;  %v1626_v1 = vld [vmem:[#allocation8 + $0x54] sm:$0xf0]  ;;  %v1624_v2 = vld [vmem:[#allocation8 + $0x4c] sm:$0xf]  ;;  %v1390_v4 = vor.u32 %v1625_v60, %v1389_v59  ;;  %v1394_v5 = vor.u32 %v1623_v61, %v1391_v63 }
  0x24   :  { %351 = vmatpush.bf16.msra.mxu1 %v1426_v45  ;;  %v1399_v3 = vld [vmem:[#allocation8 + $0x58] sm:$0xf0]  ;;  %v1398_v6 = vor.u32 %v1626_v1, %v1397_v0  ;;  %v1373_v7 = vld [vmem:[#allocation8 + $0x20] sm:$0xf]  ;;  %v1621_v8 = vld [vmem:[#allocation8 + $0x2c] sm:$0xf0] }
  0x25   :  { %380 = vmatpush.bf16.msra.mxu2 %v1430_v46  ;;  %409 = vmatpush.bf16.msra.mxu3 %v1434_v50  ;;  %v1619_v9 = vld [vmem:[#allocation8 + $0x24] sm:$0xf]  ;;  %v1402_v10 = vor.u32 %v1624_v2, %v1399_v3  ;;  %v1375_v11 = vld [vmem:[#allocation8 + $0x30] sm:$0xf0]  ;;  %v1381_v12 = vld [vmem:[#allocation8 + $0x28] sm:$0xf]  ;;  %v1374_v16 = vor.u32 %v1621_v8, %v1373_v7 }
  0x26   :  { %v1622_v13 = vld [vmem:[#allocation8 + $0x34] sm:$0xf0]  ;;  %v1620_v14 = vld [vmem:[#allocation8 + $0x2c] sm:$0xf]  ;;  %v1383_v15 = vld [vmem:[#allocation8 + $0x38] sm:$0xf0]  ;;  %v1378_v18 = vor.u32 %v1619_v9, %v1375_v11 }
  0x27   :  { %323 = vmatpush.bf16.msra.mxu0 %v1406_v56  ;;  %v1357_v17 = vld [vmem:[#allocation8] sm:$0xf]  ;;  %v1382_v19 = vor.u32 %v1622_v13, %v1381_v12  ;;  %v1617_v20 = vld [vmem:[#allocation8 + $0xc] sm:$0xf0]  ;;  %v1615_v21 = vld [vmem:[#allocation8 + $0x4] sm:$0xf]  ;;  %v1386_v23 = vor.u32 %v1620_v14, %v1383_v15 }
  0x28   :  { %352 = vmatpush.bf16.msra.mxu1 %v1410_v57  ;;  %v1359_v22 = vld [vmem:[#allocation8 + $0x10] sm:$0xf0]  ;;  %v1365_v24 = vld [vmem:[#allocation8 + $0x8] sm:$0xf]  ;;  %v1618_v25 = vld [vmem:[#allocation8 + $0x14] sm:$0xf0]  ;;  %v1358_v30 = vor.u32 %v1617_v20, %v1357_v17 }
  0x29   :  { %381 = vmatpush.bf16.msra.mxu2 %v1414_v58  ;;  %410 = vmatpush.bf16.msra.mxu3 %v1418_v62  ;;  %v1616_v26 = vld [vmem:[#allocation8 + $0xc] sm:$0xf]  ;;  %v1367_v27 = vld [vmem:[#allocation8 + $0x18] sm:$0xf0]  ;;  %v1597_v28 = vld [vmem:[#allocation11 + $0xe0] sm:$0xf]  ;;  %v1362_v33 = vor.u32 %v1615_v21, %v1359_v22  ;;  %v1366_v34 = vor.u32 %v1618_v25, %v1365_v24 }
  0x2a   :  { %v1677_v29 = vld [vmem:[#allocation11 + $0xec] sm:$0xf0]  ;;  %v1675_v31 = vld [vmem:[#allocation11 + $0xe4] sm:$0xf]  ;;  %v1599_v32 = vld [vmem:[#allocation11 + $0xf0] sm:$0xf0]  ;;  %v1370_v36 = vor.u32 %v1616_v26, %v1367_v27 }
  0x2b   :  { %324 = vmatpush.bf16.msra.mxu0 %v1390_v4  ;;  %v1611_v35 = vld [vmem:[#allocation5] sm:$0xff]  ;;  %v1947_v37 = vor.u32 %v1677_v29, %v1597_v28  ;;  %v1605_v38 = vld [vmem:[#allocation11 + $0xe8] sm:$0xf]  ;;  %v1678_v39 = vld [vmem:[#allocation11 + $0xf4] sm:$0xf0]  ;;  %v1949_v41 = vor.u32 %v1675_v31, %v1599_v32  ;;  %s1906_s2 = smov [#allocation13]  }
  0x2c   :  { %353 = vmatpush.bf16.msra.mxu1 %v1394_v5  ;;  %v1676_v40 = vld [vmem:[#allocation11 + $0xec] sm:$0xf]  ;;  %v1607_v42 = vld [vmem:[#allocation11 + $0xf8] sm:$0xf0]  ;;  %v1581_v43 = vld [vmem:[#allocation11 + $0xc0] sm:$0xf]  ;;  %v1951_v47 = vor.u32 %v1678_v39, %v1605_v38 }
  0x2d   :  { %382 = vmatpush.bf16.msra.mxu2 %v1398_v6  ;;  %411 = vmatpush.bf16.msra.mxu3 %v1402_v10  ;;  %v1673_v44 = vld [vmem:[#allocation11 + $0xcc] sm:$0xf0]  ;;  %v1671_v45 = vld [vmem:[#allocation11 + $0xc4] sm:$0xf]  ;;  %v1583_v46 = vld [vmem:[#allocation11 + $0xd0] sm:$0xf0]  ;;  %v1954_v48 = vor.u32 %v1676_v40, %v1607_v42 }
  0x2e   :  { %v1956_v49 = vor.u32 %v1673_v44, %v1581_v43  ;;  %v1589_v50 = vld [vmem:[#allocation11 + $0xc8] sm:$0xf]  ;;  %v1674_v51 = vld [vmem:[#allocation11 + $0xd4] sm:$0xf0]  ;;  %v1672_v52 = vld [vmem:[#allocation11 + $0xcc] sm:$0xf]  ;;  %v1959_v53 = vor.u32 %v1671_v45, %v1583_v46 }
  0x2f   :  { %325 = vmatpush.bf16.msra.mxu0 %v1374_v16  ;;  %v1591_v54 = vld [vmem:[#allocation11 + $0xd8] sm:$0xf0]  ;;  %v1565_v55 = vld [vmem:[#allocation11 + $0xa0] sm:$0xf]  ;;  %v1669_v56 = vld [vmem:[#allocation11 + $0xac] sm:$0xf0]  ;;  %v1962_v59 = vor.u32 %v1674_v51, %v1589_v50 }
  0x30   :  { %354 = vmatpush.bf16.msra.mxu1 %v1378_v18  ;;  %v1667_v57 = vld [vmem:[#allocation11 + $0xa4] sm:$0xf]  ;;  %v1567_v58 = vld [vmem:[#allocation11 + $0xb0] sm:$0xf0]  ;;  %v1966_v60 = vor.u32 %v1672_v52, %v1591_v54  ;;  %v1968_v61 = vor.u32 %v1669_v56, %v1565_v55  ;;  %v1573_v62 = vld [vmem:[#allocation11 + $0xa8] sm:$0xf] }
  0x31   :  { %383 = vmatpush.bf16.msra.mxu2 %v1382_v19  ;;  %412 = vmatpush.bf16.msra.mxu3 %v1386_v23  ;;  %v1670_v63 = vld [vmem:[#allocation11 + $0xb4] sm:$0xf0]  ;;  %v1668_v0 = vld [vmem:[#allocation11 + $0xac] sm:$0xf]  ;;  %v1971_v1 = vor.u32 %v1667_v57, %v1567_v58  ;;  %v1575_v2 = vld [vmem:[#allocation11 + $0xb8] sm:$0xf0] }
  0x32   :  { %v1549_v3 = vld [vmem:[#allocation11 + $0x80] sm:$0xf]  ;;  %v1665_v4 = vld [vmem:[#allocation11 + $0x8c] sm:$0xf0]  ;;  %v1663_v5 = vld [vmem:[#allocation11 + $0x84] sm:$0xf]  ;;  %v1974_v7 = vor.u32 %v1670_v63, %v1573_v62  ;;  %v1978_v8 = vor.u32 %v1668_v0, %v1575_v2 }
  0x33   :  { %326 = vmatpush.bf16.msra.mxu0 %v1358_v30  ;;  %v1551_v6 = vld [vmem:[#allocation11 + $0x90] sm:$0xf0]  ;;  %v1980_v9 = vor.u32 %v1665_v4, %v1549_v3  ;;  %v1557_v10 = vld [vmem:[#allocation11 + $0x88] sm:$0xf]  ;;  %v1666_v11 = vld [vmem:[#allocation11 + $0x94] sm:$0xf0] }
  0x34   :  { %355 = vmatpush.bf16.msra.mxu1 %v1362_v33  ;;  %v1664_v12 = vld [vmem:[#allocation11 + $0x8c] sm:$0xf]  ;;  %v1983_v13 = vor.u32 %v1663_v5, %v1551_v6  ;;  %v1559_v14 = vld [vmem:[#allocation11 + $0x98] sm:$0xf0]  ;;  %v1533_v15 = vld [vmem:[#allocation11 + $0x60] sm:$0xf]  ;;  %v1986_v20 = vor.u32 %v1666_v11, %v1557_v10 }
  0x35   :  { %384 = vmatpush.bf16.msra.mxu2 %v1366_v34  ;;  %413 = vmatpush.bf16.msra.mxu3 %v1370_v36  ;;  %v1661_v16 = vld [vmem:[#allocation11 + $0x6c] sm:$0xf0]  ;;  %v1659_v17 = vld [vmem:[#allocation11 + $0x64] sm:$0xf]  ;;  %v1535_v18 = vld [vmem:[#allocation11 + $0x70] sm:$0xf0]  ;;  %v1990_v21 = vor.u32 %v1664_v12, %v1559_v14 }
  0x36   :  { %327 = vmatmul.bf16.vlgmr.msra.gmra.mxu0 %v1611_v35  ;;  %v1612_v19 = vld [vmem:[#allocation5 + $0x8] sm:$0xff]  ;;  %v1992_v22 = vor.u32 %v1661_v16, %v1533_v15  ;;  %v1662_v24 = vld [vmem:[#allocation11 + $0x74] sm:$0xf0]  ;;  %v1660_v25 = vld [vmem:[#allocation11 + $0x6c] sm:$0xf]  ;;  %v1995_v26 = vor.u32 %v1659_v17, %v1535_v18  ;;  %v1905_v18 = vmov 0.0|0.0  }
  0x37   :  { %666 = vmatpush.bf16.msrb.mxu0 %v1947_v37  ;;  %356 = vmatmul.bf16.vlgmr.msra.gmra.mxu1 %v1611_v35  ;;  %v1541_v23 = vld [vmem:[#allocation11 + $0x68] sm:$0xf]  ;;  %v1543_v27 = vld [vmem:[#allocation11 + $0x78] sm:$0xf0]  ;;  %v1517_v28 = vld [vmem:[#allocation11 + $0x40] sm:$0xf] }
  0x38   :  { %679 = vmatpush.bf16.msrb.mxu1 %v1949_v41  ;;  %385 = vmatmul.bf16.vlgmr.msra.gmra.mxu2 %v1611_v35  ;;  %v1657_v29 = vld [vmem:[#allocation11 + $0x4c] sm:$0xf0]  ;;  %v1655_v30 = vld [vmem:[#allocation11 + $0x44] sm:$0xf]  ;;  %v1519_v31 = vld [vmem:[#allocation11 + $0x50] sm:$0xf0]  ;;  %v1998_v32 = vor.u32 %v1662_v24, %v1541_v23  ;;  %v2002_v33 = vor.u32 %v1660_v25, %v1543_v27 }
  0x39   :  { %414 = vmatmul.bf16.vlgmr.msra.gmra.mxu3 %v1611_v35  ;;  %692 = vmatpush.bf16.msrb.mxu2 %v1951_v47  ;;  %v2004_v34 = vor.u32 %v1657_v29, %v1517_v28  ;;  %v1525_v35 = vld [vmem:[#allocation11 + $0x48] sm:$0xf]  ;;  %v1658_v36 = vld [vmem:[#allocation11 + $0x54] sm:$0xf0]  ;;  %v2007_v38 = vor.u32 %v1655_v30, %v1519_v31  ;;  %v1656_v39 = vld [vmem:[#allocation11 + $0x4c] sm:$0xf] }
  0x3a   :  { %705 = vmatpush.bf16.msrb.mxu3 %v1954_v48  ;;  %v1527_v40 = vld [vmem:[#allocation11 + $0x58] sm:$0xf0]  ;;  %v2010_v42 = vor.u32 %v1658_v36, %v1525_v35  ;;  %v1501_v43 = vld [vmem:[#allocation11 + $0x20] sm:$0xf]  ;;  %v1653_v44 = vld [vmem:[#allocation11 + $0x2c] sm:$0xf0] }
  0x3b   :  { %667 = vmatpush.bf16.msrb.mxu0 %v1956_v49  ;;  %v1651_v45 = vld [vmem:[#allocation11 + $0x24] sm:$0xf]  ;;  %v2014_v46 = vor.u32 %v1656_v39, %v1527_v40  ;;  %v2016_v50 = vor.u32 %v1653_v44, %v1501_v43  ;;  %v1503_v51 = vld [vmem:[#allocation11 + $0x30] sm:$0xf0]  ;;  %v1509_v52 = vld [vmem:[#allocation11 + $0x28] sm:$0xf] }
  0x3c   :  { %680 = vmatpush.bf16.msrb.mxu1 %v1959_v53  ;;  %v1654_v54 = vld [vmem:[#allocation11 + $0x34] sm:$0xf0]  ;;  %v2019_v55 = vor.u32 %v1651_v45, %v1503_v51  ;;  %v1652_v56 = vld [vmem:[#allocation11 + $0x2c] sm:$0xf]  ;;  %v1511_v57 = vld [vmem:[#allocation11 + $0x38] sm:$0xf0] }
  0x3d   :  { %693 = vmatpush.bf16.msrb.mxu2 %v1962_v59  ;;  %v1485_v58 = vld [vmem:[#allocation11] sm:$0xf]  ;;  %v1649_v62 = vld [vmem:[#allocation11 + $0xc] sm:$0xf0]  ;;  %v1647_v63 = vld [vmem:[#allocation11 + $0x4] sm:$0xf]  ;;  %v2022_v2 = vor.u32 %v1654_v54, %v1509_v52  ;;  %v2026_v3 = vor.u32 %v1652_v56, %v1511_v57 }
  0x3e   :  { %706 = vmatpush.bf16.msrb.mxu3 %v1966_v60  ;;  %v1487_v0 = vld [vmem:[#allocation11 + $0x10] sm:$0xf0]  ;;  %v2028_v4 = vor.u32 %v1649_v62, %v1485_v58  ;;  %v1493_v5 = vld [vmem:[#allocation11 + $0x8] sm:$0xf]  ;;  %v1650_v6 = vld [vmem:[#allocation11 + $0x14] sm:$0xf0] }
  0x3f   :  { %668 = vmatpush.bf16.msrb.mxu0 %v1968_v61  ;;  %v2031_v10 = vor.u32 %v1647_v63, %v1487_v0  ;;  %v1648_v11 = vld [vmem:[#allocation11 + $0xc] sm:$0xf]  ;;  %v1495_v12 = vld [vmem:[#allocation11 + $0x18] sm:$0xf0]  ;;  %v2034_v14 = vor.u32 %v1650_v6, %v1493_v5  ;;  %v1614_v17 = vld [vmem:[#allocation5 + $0x18] sm:$0xff]  ;;  %s1322_s3 = sshll.u32 %s1906_s2, 4  ;;  %s1323_s3 = int_to_ptr.vmem [resolvable:$true] %s1322_s3 }
  0x40   :  { %681 = vmatpush.bf16.msrb.mxu1 %v1971_v1  ;;  %v2038_v15 = vor.u32 %v1648_v11, %v1495_v12  ;;  %v1613_v16 = vld [vmem:[#allocation5 + $0x10] sm:$0xff]  ;;  %v125_v24 = vld [vmem:[#allocation10] sm:$0xf]  ;;  %s1324_s13 = sshll.u32 %s2407_s4, 4  ;;  %s1325_s13 = int_to_ptr.hbm [resolvable:$true] %s1324_s13 }
  0x41   :  { %694 = vmatpush.bf16.msrb.mxu2 %v1974_v7  ;;  %v127_v25 = vperm.slane %v125_v24, 0  ;;  %v128_v28 = vperm.slane %v125_v24, 1  ;;  %v2115_v39 = vperm.slane %v125_v24, 2  ;;  %v2117_v40 = vperm.slane %v125_v24, 3 }
  0x42   :  { %707 = vmatpush.bf16.msrb.mxu3 %v1978_v8 }
  0x43   :  { %669 = vmatpush.bf16.msrb.mxu0 %v1980_v9 }
  0x44   :  { %682 = vmatpush.bf16.msrb.mxu1 %v1983_v13 }
  0x45   :  { %695 = vmatpush.bf16.msrb.mxu2 %v1986_v20 }
  0x46   :  { %708 = vmatpush.bf16.msrb.mxu3 %v1990_v21  ;;  %332 = vmatmul.bf16.gmra.mxu0 %v1612_v19 }
  0x47   :  { %670 = vmatpush.bf16.msrb.mxu0 %v1992_v22  ;;  %361 = vmatmul.bf16.gmra.mxu1 %v1612_v19 }
  0x48   :  { %683 = vmatpush.bf16.msrb.mxu1 %v1995_v26  ;;  %390 = vmatmul.bf16.gmra.mxu2 %v1612_v19 }
  0x49   :  { %419 = vmatmul.bf16.gmra.mxu3 %v1612_v19  ;;  %696 = vmatpush.bf16.msrb.mxu2 %v1998_v32 }
  0x4a   :  { %709 = vmatpush.bf16.msrb.mxu3 %v2002_v33 }
  0x4b   :  { %671 = vmatpush.bf16.msrb.mxu0 %v2004_v34 }
  0x4c   :  { %684 = vmatpush.bf16.msrb.mxu1 %v2007_v38 }
  0x4d   :  { %697 = vmatpush.bf16.msrb.mxu2 %v2010_v42 }
  0x4e   :  { %710 = vmatpush.bf16.msrb.mxu3 %v2014_v46 }
  0x4f   :  { %672 = vmatpush.bf16.msrb.mxu0 %v2016_v50 }
  0x50   :  { %685 = vmatpush.bf16.msrb.mxu1 %v2019_v55 }
  0x51   :  { %698 = vmatpush.bf16.msrb.mxu2 %v2022_v2 }
  0x52   :  { %711 = vmatpush.bf16.msrb.mxu3 %v2026_v3 }
  0x53   :  { %673 = vmatpush.bf16.msrb.mxu0 %v2028_v4 }
  0x54   :  { %686 = vmatpush.bf16.msrb.mxu1 %v2031_v10 }
  0x55   :  { %699 = vmatpush.bf16.msrb.mxu2 %v2034_v14 }
  0x56   :  { %712 = vmatpush.bf16.msrb.mxu3 %v2038_v15  ;;  %337 = vmatmul.bf16.gmra.mxu0 %v1613_v16 }
  0x57   :  { %747 = vmatpush.bf16.msra.mxu0 %v1947_v37  ;;  %366 = vmatmul.bf16.gmra.mxu1 %v1613_v16 }
  0x58   :  { %760 = vmatpush.bf16.msra.mxu1 %v1949_v41  ;;  %395 = vmatmul.bf16.gmra.mxu2 %v1613_v16 }
  0x59   :  { %773 = vmatpush.bf16.msra.mxu2 %v1951_v47  ;;  %424 = vmatmul.bf16.gmra.mxu3 %v1613_v16 }
  0x5a   :  { %786 = vmatpush.bf16.msra.mxu3 %v1954_v48 }
  0x5b   :  { %748 = vmatpush.bf16.msra.mxu0 %v1956_v49 }
  0x5c   :  { %761 = vmatpush.bf16.msra.mxu1 %v1959_v53 }
  0x5d   :  { %774 = vmatpush.bf16.msra.mxu2 %v1962_v59 }
  0x5e   :  { %787 = vmatpush.bf16.msra.mxu3 %v1966_v60 }
  0x5f   :  { %749 = vmatpush.bf16.msra.mxu0 %v1968_v61 }
  0x60   :  { %762 = vmatpush.bf16.msra.mxu1 %v1971_v1 }
  0x61   :  { %775 = vmatpush.bf16.msra.mxu2 %v1974_v7 }
  0x62   :  { %788 = vmatpush.bf16.msra.mxu3 %v1978_v8 }
  0x63   :  { %750 = vmatpush.bf16.msra.mxu0 %v1980_v9 }
  0x64   :  { %763 = vmatpush.bf16.msra.mxu1 %v1983_v13 }
  0x65   :  { %776 = vmatpush.bf16.msra.mxu2 %v1986_v20 }
  0x66   :  { %789 = vmatpush.bf16.msra.mxu3 %v1990_v21  ;;  %342 = vmatmul.bf16.gmra.mxu0 %v1614_v17 }
  0x67   :  { %751 = vmatpush.bf16.msra.mxu0 %v1992_v22  ;;  %371 = vmatmul.bf16.gmra.mxu1 %v1614_v17 }
  0x68   :  { %764 = vmatpush.bf16.msra.mxu1 %v1995_v26  ;;  %400 = vmatmul.bf16.gmra.mxu2 %v1614_v17 }
  0x69   :  { %777 = vmatpush.bf16.msra.mxu2 %v1998_v32  ;;  %429 = vmatmul.bf16.gmra.mxu3 %v1614_v17 }
  0x6a   :  { %790 = vmatpush.bf16.msra.mxu3 %v2002_v33 }
  0x6b   :  { %752 = vmatpush.bf16.msra.mxu0 %v2004_v34 }
  0x6c   :  { %765 = vmatpush.bf16.msra.mxu1 %v2007_v38 }
  0x6d   :  { %778 = vmatpush.bf16.msra.mxu2 %v2010_v42 }
  0x6e   :  { %791 = vmatpush.bf16.msra.mxu3 %v2014_v46 }
  0x6f   :  { %753 = vmatpush.bf16.msra.mxu0 %v2016_v50 }
  0x70   :  { %766 = vmatpush.bf16.msra.mxu1 %v2019_v55 }
  0x71   :  { %779 = vmatpush.bf16.msra.mxu2 %v2022_v2 }
  0x72   :  { %792 = vmatpush.bf16.msra.mxu3 %v2026_v3 }
  0x73   :  { %754 = vmatpush.bf16.msra.mxu0 %v2028_v4 }
  0x74   :  { %767 = vmatpush.bf16.msra.mxu1 %v2031_v10 }
  0x75   :  { %780 = vmatpush.bf16.msra.mxu2 %v2034_v14 }
  0x76   :  { %793 = vmatpush.bf16.msra.mxu3 %v2038_v15  ;;  %674 = vmatmul.bf16.vlgmr.msrb.gmra.mxu0 %v1905_v18 }
  0x77   :  { %687 = vmatmul.bf16.vlgmr.msrb.gmra.mxu1 %v1905_v18  ;;  %829 = vmatpush.bf16.msrb.mxu0 %v1947_v37 }
  0x78   :  { %700 = vmatmul.bf16.vlgmr.msrb.gmra.mxu2 %v1905_v18  ;;  %842 = vmatpush.bf16.msrb.mxu1 %v1949_v41 }
  0x79   :  { %713 = vmatmul.bf16.vlgmr.msrb.gmra.mxu3 %v1905_v18  ;;  %855 = vmatpush.bf16.msrb.mxu2 %v1951_v47 }
  0x7a   :  { %868 = vmatpush.bf16.msrb.mxu3 %v1954_v48 }
  0x7b   :  { %830 = vmatpush.bf16.msrb.mxu0 %v1956_v49 }
  0x7c   :  { %843 = vmatpush.bf16.msrb.mxu1 %v1959_v53 }
  0x7d   :  { %856 = vmatpush.bf16.msrb.mxu2 %v1962_v59 }
  0x7e   :  { %869 = vmatpush.bf16.msrb.mxu3 %v1966_v60 }
  0x7f   :  { %831 = vmatpush.bf16.msrb.mxu0 %v1968_v61 }
  0x80   :  { %844 = vmatpush.bf16.msrb.mxu1 %v1971_v1 }
  0x81   :  { %857 = vmatpush.bf16.msrb.mxu2 %v1974_v7 }
  0x82   :  { %870 = vmatpush.bf16.msrb.mxu3 %v1978_v8 }
  0x83   :  { %832 = vmatpush.bf16.msrb.mxu0 %v1980_v9 }
  0x84   :  { %845 = vmatpush.bf16.msrb.mxu1 %v1983_v13 }
  0x85   :  { %858 = vmatpush.bf16.msrb.mxu2 %v1986_v20 }
  0x86   :  { %871 = vmatpush.bf16.msrb.mxu3 %v1990_v21 }
  0x87   :  { %833 = vmatpush.bf16.msrb.mxu0 %v1992_v22 }
  0x88   :  { %846 = vmatpush.bf16.msrb.mxu1 %v1995_v26 }
  0x89   :  { %859 = vmatpush.bf16.msrb.mxu2 %v1998_v32 }
  0x8a   :  { %872 = vmatpush.bf16.msrb.mxu3 %v2002_v33 }
  0x8b   :  { %834 = vmatpush.bf16.msrb.mxu0 %v2004_v34 }
  0x8c   :  { %847 = vmatpush.bf16.msrb.mxu1 %v2007_v38 }
  0x8d   :  { %860 = vmatpush.bf16.msrb.mxu2 %v2010_v42 }
  0x8e   :  { %873 = vmatpush.bf16.msrb.mxu3 %v2014_v46 }
  0x8f   :  { %835 = vmatpush.bf16.msrb.mxu0 %v2016_v50 }
  0x90   :  { %848 = vmatpush.bf16.msrb.mxu1 %v2019_v55 }
  0x91   :  { %861 = vmatpush.bf16.msrb.mxu2 %v2022_v2 }
  0x92   :  { %874 = vmatpush.bf16.msrb.mxu3 %v2026_v3 }
  0x93   :  { %836 = vmatpush.bf16.msrb.mxu0 %v2028_v4 }
  0x94   :  { %849 = vmatpush.bf16.msrb.mxu1 %v2031_v10 }
  0x95   :  { %862 = vmatpush.bf16.msrb.mxu2 %v2034_v14 }
  0x96   :  { %875 = vmatpush.bf16.msrb.mxu3 %v2038_v15 }
  0xb3   :  { %v328_v19 = vpop.f32.mrf.mxu0 }
  0xb4   :  { %v357_v23 = vpop.f32.mrf.mxu1 }
  0xbb   :  { %v2107_v27 = vpop.f32.mrf.mxu2  ;;  %v330_v30 = vpop.f32.mrf.mxu0 }
  0xbc   :  { %v2109_v29 = vpop.f32.mrf.mxu3  ;;  %v2111_v31 = vadd.f32 %v330_v30, %v127_v25  ;;  %v359_v35 = vpop.f32.mrf.mxu1 }
  0xbd   :  { %v2113_v36 = vadd.f32 %v359_v35, %v128_v28 }
  0xc3   :  { %v388_v43 = vpop.f32.mrf.mxu2  ;;  %v333_v51 = vpop.f32.mrf.mxu0 }
  0xc4   :  { %v2120_v44 = vadd.f32 %v388_v43, %v2115_v39  ;;  %v417_v45 = vpop.f32.mrf.mxu3  ;;  %v2125_v54 = vadd.f32 %v333_v51, %v127_v25  ;;  %v362_v56 = vpop.f32.mrf.mxu1 }
  0xc5   :  { %v2123_v52 = vadd.f32 %v417_v45, %v2117_v40  ;;  %v2127_v57 = vadd.f32 %v362_v56, %v128_v28 }
  0xcb   :  { %v391_v58 = vpop.f32.mrf.mxu2  ;;  %v335_v0 = vpop.f32.mrf.mxu0 }
  0xcc   :  { %v2130_v62 = vadd.f32 %v391_v58, %v2115_v39  ;;  %v420_v63 = vpop.f32.mrf.mxu3  ;;  %v2135_v6 = vadd.f32 %v335_v0, %v127_v25  ;;  %v364_v11 = vpop.f32.mrf.mxu1 }
  0xcd   :  { %v2133_v5 = vadd.f32 %v420_v63, %v2117_v40  ;;  %v2137_v12 = vadd.f32 %v364_v11, %v128_v28 }
  0xcf   :  { %2408 = vst [vmem:[#allocation18_spill] sm:$0xff] %v2137_v12 }
  0xd3   :  { %v393_v16 = vpop.f32.mrf.mxu2  ;;  %v338_v24 = vpop.f32.mrf.mxu0 }
  0xd4   :  { %v2140_v17 = vadd.f32 %v393_v16, %v2115_v39  ;;  %v422_v18 = vpop.f32.mrf.mxu3  ;;  %v2145_v35 = vadd.f32 %v338_v24, %v127_v25  ;;  %v367_v43 = vpop.f32.mrf.mxu1 }
  0xd5   :  { %v2143_v30 = vadd.f32 %v422_v18, %v2117_v40  ;;  %v2147_v45 = vadd.f32 %v367_v43, %v128_v28 }
  0xd6   :  { %2409 = vst [vmem:[#allocation19_spill] sm:$0xff] %v2140_v17 }
  0xd7   :  { %2410 = vst [vmem:[#allocation20_spill] sm:$0xff] %v2143_v30 }
  0xd8   :  { %2411 = vst [vmem:[#allocation21_spill] sm:$0xff] %v2145_v35 }
  0xd9   :  { %2412 = vst [vmem:[#allocation22_spill] sm:$0xff] %v2147_v45 }
  0xdb   :  { %v396_v51 = vpop.f32.mrf.mxu2  ;;  %v340_v63 = vpop.f32.mrf.mxu0 }
  0xdc   :  { %v2150_v56 = vadd.f32 %v396_v51, %v2115_v39  ;;  %v425_v58 = vpop.f32.mrf.mxu3  ;;  %v2155_v11 = vadd.f32 %v340_v63, %v127_v25  ;;  %v369_v16 = vpop.f32.mrf.mxu1 }
  0xdd   :  { %v2153_v0 = vadd.f32 %v425_v58, %v2117_v40  ;;  %v2157_v17 = vadd.f32 %v369_v16, %v128_v28 }
  0xde   :  { %2413 = vst [vmem:[#allocation23_spill] sm:$0xff] %v2150_v56 }
  0xdf   :  { %2414 = vst [vmem:[#allocation24_spill] sm:$0xff] %v2153_v0 }
  0xe0   :  { %2415 = vst [vmem:[#allocation25_spill] sm:$0xff] %v2155_v11 }
  0xe1   :  { %2416 = vst [vmem:[#allocation26_spill] sm:$0xff] %v2157_v17 }
  0xe3   :  { %v398_v18 = vpop.f32.mrf.mxu2  ;;  %v343_v45 = vpop.f32.mrf.mxu0 }
  0xe4   :  { %v2160_v24 = vadd.f32 %v398_v18, %v2115_v39  ;;  %v427_v43 = vpop.f32.mrf.mxu3  ;;  %v2165_v51 = vadd.f32 %v343_v45, %v127_v25  ;;  %v372_v56 = vpop.f32.mrf.mxu1 }
  0xe5   :  { %v2163_v35 = vadd.f32 %v427_v43, %v2117_v40  ;;  %v2167_v30 = vadd.f32 %v372_v56, %v128_v28  ;;  %v329_v43 = vadd.f32 %v328_v19, %v127_v25  ;;  %v416_v19 = vadd.f32 %v2109_v29, %v2117_v40 }
  0xe6   :  { %2417 = vst [vmem:[#allocation27_spill] sm:$0xff] %v2160_v24 }
  0xe7   :  { %2418 = vst [vmem:[#allocation28_spill] sm:$0xff] %v2163_v35 }
  0xe8   :  { %2419 = vst [vmem:[#allocation29_spill] sm:$0xff] %v2165_v51  ;;  %v358_v51 = vadd.f32 %v357_v23, %v128_v28 }
  0xe9   :  { %2420 = vst [vmem:[#allocation30_spill] sm:$0xff] %v2167_v30 }
  0xeb   :  { %v401_v58 = vpop.f32.mrf.mxu2  ;;  %v345_v17 = vpop.f32.mrf.mxu0 }
  0xec   :  { %v2170_v63 = vadd.f32 %v401_v58, %v2115_v39  ;;  %v430_v16 = vpop.f32.mrf.mxu3  ;;  %v2175_v18 = vadd.f32 %v345_v17, %v127_v25  ;;  %v374_v24 = vpop.f32.mrf.mxu1 }
  0xed   :  { %v2173_v11 = vadd.f32 %v430_v16, %v2117_v40  ;;  %v2177_v0 = vadd.f32 %v374_v24, %v128_v28  ;;  %v387_v24 = vadd.f32 %v2107_v27, %v2115_v39 }
  0xee   :  { %2421 = vst [vmem:[#allocation31_spill] sm:$0xff] %v2170_v63 }
  0xef   :  { %2422 = vst [vmem:[#allocation32_spill] sm:$0xff] %v2173_v11 }
  0xf3   :  { %v403_v45 = vpop.f32.mrf.mxu2  ;;  %v675_v35 = vpop.f32.mrf.mxu0 }
  0xf4   :  { %v2180_v56 = vadd.f32 %v403_v45, %v2115_v39  ;;  %v432_v30 = vpop.f32.mrf.mxu3  ;;  %v718_v63 = vadd.f32 %v675_v35, %v329_v43  ;;  %v688_v12 = vpop.f32.mrf.mxu1 }
  0xf5   :  { %v2183_v58 = vadd.f32 %v432_v30, %v2117_v40  ;;  %v719_v16 = vadd.f32 %v688_v12, %v358_v51 }
  0xf6   :  { %2423 = vst [vmem:[#allocation33_spill] sm:$0xff] %v2180_v56  ;;  %v722_v11 = vmul.f32 0.5, %v718_v63 }
  0xf7   :  { %2424 = vst [vmem:[#allocation34_spill] sm:$0xff] %v2183_v58  ;;  %v726_v17 = vmul.f32 0.5, %v719_v16 }
  0xf8   :  { %1689 = vtanh.f32 %v722_v11 }
  0xf9   :  { %1691 = vtanh.f32 %v726_v17 }
  0xfb   :  { %v701_v23 = vpop.f32.mrf.mxu2  ;;  %v677_v45 = vpop.f32.mrf.mxu0 }
  0xfc   :  { %v720_v25 = vadd.f32 %v701_v23, %v387_v24  ;;  %v714_v28 = vpop.f32.mrf.mxu3  ;;  %v690_v30 = vpop.f32.mrf.mxu1 }
  0xfd   :  { %v721_v56 = vadd.f32 %v714_v28, %v416_v19 }
  0xfe   :  { %1693 = vtanh.f32 %v720_v25  ;;  %v1690_v35 = vpop.eup %1689 }
  0xff   :  { %v731_v43 = vmul.f32 0.5, %v721_v56  ;;  %v1692_v12 = vpop.eup %1691  ;;  %v724_v51 = vmul.f32 0.5, %v1690_v35 }
 0x100   :  { %v728_v63 = vmul.f32 0.5, %v1692_v12 }
 0x101   :  { %1695 = vtanh.f32 %v731_v43  ;;  %v725_v11 = vadd.f32 0.5, %v724_v51 }
 0x102   :  { %v729_v16 = vadd.f32 0.5, %v728_v63 }
 0x103   :  { %v703_v27 = vpop.f32.mrf.mxu2 }
 0x104   :  { %v1694_v39 = vpop.eup %1693  ;;  %v716_v17 = vpop.f32.mrf.mxu3  ;;  %v735_v58 = vmul.f32 0.0, %v729_v16 }
 0x105   :  { %v736_v29 = vmul.f32 %v1694_v39, %v725_v11 }
 0x107   :  { %v1696_v40 = vpop.eup %1695  ;;  %v2189_v24 = vadd.f32 %v736_v29, %v735_v58 }
 0x108   :  { %v733_v19 = vmul.f32 0.5, %v1696_v40 }
 0x109   :  { %1697 = vtanh.f32 %v2189_v24 }
 0x10a   :  { %v734_v23 = vadd.f32 0.5, %v733_v19 }
 0x10f   :  { %v1698_v25 = vpop.eup %1697 }
 0x110   :  { %v739_v56 = vmul.f32 %v1698_v25, %v734_v23 }
 0x112   :  { %v740_v28 = vpack.c.bf16 %v739_v56, %v739_v56 }
 0x114   :  { %741 = vst [vmem:[#allocation13] sm:$0xf] %v740_v28  ;;  %755 = vmatmul.bf16.vlgmr.msra.gmra.mxu0 %v740_v28  ;;  %768 = vmatmul.bf16.vlgmr.msra.gmra.mxu1 %v740_v28 }
 0x115   :  { %781 = vmatmul.bf16.vlgmr.msra.gmra.mxu2 %v740_v28  ;;  %794 = vmatmul.bf16.vlgmr.msra.gmra.mxu3 %v740_v28 }
 0x116   :  { %911 = vmatpush.bf16.msra.mxu0 %v1947_v37  ;;  %924 = vmatpush.bf16.msra.mxu1 %v1949_v41 }
 0x117   :  { %937 = vmatpush.bf16.msra.mxu2 %v1951_v47  ;;  %950 = vmatpush.bf16.msra.mxu3 %v1954_v48 }
 0x11a   :  { %912 = vmatpush.bf16.msra.mxu0 %v1956_v49  ;;  %925 = vmatpush.bf16.msra.mxu1 %v1959_v53 }
 0x11b   :  { %938 = vmatpush.bf16.msra.mxu2 %v1962_v59  ;;  %951 = vmatpush.bf16.msra.mxu3 %v1966_v60 }
 0x11e   :  { %913 = vmatpush.bf16.msra.mxu0 %v1968_v61  ;;  %926 = vmatpush.bf16.msra.mxu1 %v1971_v1 }
 0x11f   :  { %939 = vmatpush.bf16.msra.mxu2 %v1974_v7  ;;  %952 = vmatpush.bf16.msra.mxu3 %v1978_v8 }
 0x122   :  { %914 = vmatpush.bf16.msra.mxu0 %v1980_v9  ;;  %927 = vmatpush.bf16.msra.mxu1 %v1983_v13 }
 0x123   :  { %940 = vmatpush.bf16.msra.mxu2 %v1986_v20  ;;  %953 = vmatpush.bf16.msra.mxu3 %v1990_v21 }
 0x126   :  { %915 = vmatpush.bf16.msra.mxu0 %v1992_v22  ;;  %928 = vmatpush.bf16.msra.mxu1 %v1995_v26 }
 0x127   :  { %941 = vmatpush.bf16.msra.mxu2 %v1998_v32  ;;  %954 = vmatpush.bf16.msra.mxu3 %v2002_v33 }
 0x12a   :  { %916 = vmatpush.bf16.msra.mxu0 %v2004_v34  ;;  %929 = vmatpush.bf16.msra.mxu1 %v2007_v38 }
 0x12b   :  { %942 = vmatpush.bf16.msra.mxu2 %v2010_v42  ;;  %955 = vmatpush.bf16.msra.mxu3 %v2014_v46 }
 0x12e   :  { %917 = vmatpush.bf16.msra.mxu0 %v2016_v50  ;;  %930 = vmatpush.bf16.msra.mxu1 %v2019_v55 }
 0x12f   :  { %943 = vmatpush.bf16.msra.mxu2 %v2022_v2  ;;  %956 = vmatpush.bf16.msra.mxu3 %v2026_v3 }
 0x132   :  { %918 = vmatpush.bf16.msra.mxu0 %v2028_v4  ;;  %931 = vmatpush.bf16.msra.mxu1 %v2031_v10 }
 0x133   :  { %944 = vmatpush.bf16.msra.mxu2 %v2034_v14  ;;  %957 = vmatpush.bf16.msra.mxu3 %v2038_v15 }
 0x191   :  { %v756_v58 = vpop.f32.mrf.mxu0  ;;  %v769_v45 = vpop.f32.mrf.mxu1 }
 0x192   :  { %v799_v30 = vadd.f32 %v756_v58, %v2111_v31  ;;  %v800_v35 = vadd.f32 %v769_v45, %v2113_v36 }
 0x194   :  { %v803_v43 = vmul.f32 0.5, %v799_v30  ;;  %v807_v12 = vmul.f32 0.5, %v800_v35 }
 0x196   :  { %1699 = vtanh.f32 %v803_v43 }
 0x197   :  { %1701 = vtanh.f32 %v807_v12 }
 0x198   :  { %v782_v51 = vpop.f32.mrf.mxu2  ;;  %v795_v63 = vpop.f32.mrf.mxu3 }
 0x199   :  { %v801_v11 = vadd.f32 %v782_v51, %v2120_v44  ;;  %v802_v16 = vadd.f32 %v795_v63, %v2123_v52  ;;  %v758_v27 = vpop.f32.mrf.mxu0  ;;  %v771_v39 = vpop.f32.mrf.mxu1 }
 0x19b   :  { %1703 = vtanh.f32 %v801_v11  ;;  %v812_v17 = vmul.f32 0.5, %v802_v16 }
 0x19c   :  { %v1700_v29 = vpop.eup %1699 }
 0x19d   :  { %v1702_v40 = vpop.eup %1701  ;;  %v805_v19 = vmul.f32 0.5, %v1700_v29  ;;  %1705 = vtanh.f32 %v812_v17 }
 0x19e   :  { %v809_v31 = vmul.f32 0.5, %v1702_v40 }
 0x19f   :  { %v806_v36 = vadd.f32 0.5, %v805_v19 }
 0x1a0   :  { %v810_v23 = vadd.f32 0.5, %v809_v31  ;;  %v784_v25 = vpop.f32.mrf.mxu2  ;;  %v797_v56 = vpop.f32.mrf.mxu3 }
 0x1a1   :  { %v1704_v28 = vpop.eup %1703 }
 0x1a2   :  { %v816_v58 = vmul.f32 %v810_v23, %v2189_v24  ;;  %v817_v45 = vmul.f32 %v1704_v28, %v806_v36 }
 0x1a3   :  { %v1706_v44 = vpop.eup %1705 }
 0x1a4   :  { %v2229_v30 = vadd.f32 %v817_v45, %v816_v58  ;;  %v814_v52 = vmul.f32 0.5, %v1706_v44 }
 0x1a6   :  { %1707 = vtanh.f32 %v2229_v30  ;;  %v815_v35 = vadd.f32 0.5, %v814_v52 }
 0x1ac   :  { %v1708_v43 = vpop.eup %1707 }
 0x1ad   :  { %v820_v12 = vmul.f32 %v1708_v43, %v815_v35 }
 0x1af   :  { %v821_v51 = vpack.c.bf16 %v820_v12, %v820_v12 }
 0x1b1   :  { %823 = vst [vmem:[#allocation13 + $0x4] sm:$0xf] %v821_v51  ;;  %837 = vmatmul.bf16.vlgmr.msrb.gmra.mxu0 %v821_v51  ;;  %850 = vmatmul.bf16.vlgmr.msrb.gmra.mxu1 %v821_v51 }
 0x1b2   :  { %863 = vmatmul.bf16.vlgmr.msrb.gmra.mxu2 %v821_v51  ;;  %876 = vmatmul.bf16.vlgmr.msrb.gmra.mxu3 %v821_v51 }
 0x1b3   :  { %993 = vmatpush.bf16.msrb.mxu0 %v1947_v37  ;;  %1006 = vmatpush.bf16.msrb.mxu1 %v1949_v41 }
 0x1b4   :  { %1019 = vmatpush.bf16.msrb.mxu2 %v1951_v47  ;;  %1032 = vmatpush.bf16.msrb.mxu3 %v1954_v48 }
 0x1b7   :  { %994 = vmatpush.bf16.msrb.mxu0 %v1956_v49  ;;  %1007 = vmatpush.bf16.msrb.mxu1 %v1959_v53 }
 0x1b8   :  { %1020 = vmatpush.bf16.msrb.mxu2 %v1962_v59  ;;  %1033 = vmatpush.bf16.msrb.mxu3 %v1966_v60 }
 0x1bb   :  { %995 = vmatpush.bf16.msrb.mxu0 %v1968_v61  ;;  %1008 = vmatpush.bf16.msrb.mxu1 %v1971_v1 }
 0x1bc   :  { %1021 = vmatpush.bf16.msrb.mxu2 %v1974_v7  ;;  %1034 = vmatpush.bf16.msrb.mxu3 %v1978_v8 }
 0x1bf   :  { %996 = vmatpush.bf16.msrb.mxu0 %v1980_v9  ;;  %1009 = vmatpush.bf16.msrb.mxu1 %v1983_v13 }
 0x1c0   :  { %1022 = vmatpush.bf16.msrb.mxu2 %v1986_v20  ;;  %1035 = vmatpush.bf16.msrb.mxu3 %v1990_v21 }
 0x1c3   :  { %997 = vmatpush.bf16.msrb.mxu0 %v1992_v22  ;;  %1010 = vmatpush.bf16.msrb.mxu1 %v1995_v26 }
 0x1c4   :  { %1023 = vmatpush.bf16.msrb.mxu2 %v1998_v32  ;;  %1036 = vmatpush.bf16.msrb.mxu3 %v2002_v33 }
 0x1c7   :  { %998 = vmatpush.bf16.msrb.mxu0 %v2004_v34  ;;  %1011 = vmatpush.bf16.msrb.mxu1 %v2007_v38 }
 0x1c8   :  { %1024 = vmatpush.bf16.msrb.mxu2 %v2010_v42  ;;  %1037 = vmatpush.bf16.msrb.mxu3 %v2014_v46 }
 0x1cb   :  { %999 = vmatpush.bf16.msrb.mxu0 %v2016_v50  ;;  %1012 = vmatpush.bf16.msrb.mxu1 %v2019_v55 }
 0x1cc   :  { %1025 = vmatpush.bf16.msrb.mxu2 %v2022_v2  ;;  %1038 = vmatpush.bf16.msrb.mxu3 %v2026_v3 }
 0x1cf   :  { %1000 = vmatpush.bf16.msrb.mxu0 %v2028_v4  ;;  %1013 = vmatpush.bf16.msrb.mxu1 %v2031_v10 }
 0x1d0   :  { %1026 = vmatpush.bf16.msrb.mxu2 %v2034_v14  ;;  %1039 = vmatpush.bf16.msrb.mxu3 %v2038_v15 }
 0x22e   :  { %v838_v24 = vpop.f32.mrf.mxu0  ;;  %v851_v63 = vpop.f32.mrf.mxu1 }
 0x22f   :  { %v881_v11 = vadd.f32 %v838_v24, %v2125_v54  ;;  %v882_v16 = vadd.f32 %v851_v63, %v2127_v57 }
 0x231   :  { %v885_v27 = vmul.f32 0.5, %v881_v11  ;;  %v889_v39 = vmul.f32 0.5, %v882_v16 }
 0x233   :  { %1709 = vtanh.f32 %v885_v27 }
 0x234   :  { %1711 = vtanh.f32 %v889_v39  ;;  %v2425_v39 = vld [vmem:[#allocation18_spill] sm:$0xff] }
 0x235   :  { %v864_v17 = vpop.f32.mrf.mxu2  ;;  %v877_v29 = vpop.f32.mrf.mxu3 }
 0x236   :  { %v883_v40 = vadd.f32 %v864_v17, %v2130_v62  ;;  %v884_v19 = vadd.f32 %v877_v29, %v2133_v5  ;;  %v840_v31 = vpop.f32.mrf.mxu0  ;;  %v853_v36 = vpop.f32.mrf.mxu1 }
 0x237   :  { %v2426_v36 = vld [vmem:[#allocation19_spill] sm:$0xff] }
 0x238   :  { %1713 = vtanh.f32 %v883_v40  ;;  %v894_v23 = vmul.f32 0.5, %v884_v19 }
 0x239   :  { %v1710_v25 = vpop.eup %1709 }
 0x23a   :  { %v1712_v56 = vpop.eup %1711  ;;  %v887_v28 = vmul.f32 0.5, %v1710_v25  ;;  %1715 = vtanh.f32 %v894_v23  ;;  %v2427_v25 = vld [vmem:[#allocation20_spill] sm:$0xff] }
 0x23b   :  { %v891_v54 = vmul.f32 0.5, %v1712_v56 }
 0x23c   :  { %v888_v57 = vadd.f32 0.5, %v887_v28 }
 0x23d   :  { %v892_v58 = vadd.f32 0.5, %v891_v54  ;;  %v866_v45 = vpop.f32.mrf.mxu2  ;;  %v879_v44 = vpop.f32.mrf.mxu3 }
 0x23e   :  { %v1714_v52 = vpop.eup %1713 }
 0x23f   :  { %v898_v35 = vmul.f32 %v892_v58, %v2229_v30  ;;  %v899_v43 = vmul.f32 %v1714_v52, %v888_v57 }
 0x240   :  { %v1716_v62 = vpop.eup %1715 }
 0x241   :  { %v2269_v12 = vadd.f32 %v899_v43, %v898_v35  ;;  %v896_v5 = vmul.f32 0.5, %v1716_v62 }
 0x243   :  { %1717 = vtanh.f32 %v2269_v12  ;;  %v897_v51 = vadd.f32 0.5, %v896_v5 }
 0x249   :  { %v1718_v24 = vpop.eup %1717 }
 0x24a   :  { %v902_v63 = vmul.f32 %v1718_v24, %v897_v51 }
 0x24c   :  { %v903_v11 = vpack.c.bf16 %v902_v63, %v902_v63 }
 0x24e   :  { %905 = vst [vmem:[#allocation13 + $0x8] sm:$0xf] %v903_v11  ;;  %919 = vmatmul.bf16.vlgmr.msra.gmra.mxu0 %v903_v11  ;;  %932 = vmatmul.bf16.vlgmr.msra.gmra.mxu1 %v903_v11 }
 0x24f   :  { %945 = vmatmul.bf16.vlgmr.msra.gmra.mxu2 %v903_v11  ;;  %958 = vmatmul.bf16.vlgmr.msra.gmra.mxu3 %v903_v11 }
 0x250   :  { %1075 = vmatpush.bf16.msra.mxu0 %v1947_v37  ;;  %1088 = vmatpush.bf16.msra.mxu1 %v1949_v41 }
 0x251   :  { %1101 = vmatpush.bf16.msra.mxu2 %v1951_v47  ;;  %1114 = vmatpush.bf16.msra.mxu3 %v1954_v48 }
 0x254   :  { %1076 = vmatpush.bf16.msra.mxu0 %v1956_v49  ;;  %1089 = vmatpush.bf16.msra.mxu1 %v1959_v53 }
 0x255   :  { %1102 = vmatpush.bf16.msra.mxu2 %v1962_v59  ;;  %1115 = vmatpush.bf16.msra.mxu3 %v1966_v60 }
 0x258   :  { %1077 = vmatpush.bf16.msra.mxu0 %v1968_v61  ;;  %1090 = vmatpush.bf16.msra.mxu1 %v1971_v1 }
 0x259   :  { %1103 = vmatpush.bf16.msra.mxu2 %v1974_v7  ;;  %1116 = vmatpush.bf16.msra.mxu3 %v1978_v8 }
 0x25c   :  { %1078 = vmatpush.bf16.msra.mxu0 %v1980_v9  ;;  %1091 = vmatpush.bf16.msra.mxu1 %v1983_v13 }
 0x25d   :  { %1104 = vmatpush.bf16.msra.mxu2 %v1986_v20  ;;  %1117 = vmatpush.bf16.msra.mxu3 %v1990_v21 }
 0x260   :  { %1079 = vmatpush.bf16.msra.mxu0 %v1992_v22  ;;  %1092 = vmatpush.bf16.msra.mxu1 %v1995_v26 }
 0x261   :  { %1105 = vmatpush.bf16.msra.mxu2 %v1998_v32  ;;  %1118 = vmatpush.bf16.msra.mxu3 %v2002_v33 }
 0x264   :  { %1080 = vmatpush.bf16.msra.mxu0 %v2004_v34  ;;  %1093 = vmatpush.bf16.msra.mxu1 %v2007_v38 }
 0x265   :  { %1106 = vmatpush.bf16.msra.mxu2 %v2010_v42  ;;  %1119 = vmatpush.bf16.msra.mxu3 %v2014_v46 }
 0x268   :  { %1081 = vmatpush.bf16.msra.mxu0 %v2016_v50  ;;  %1094 = vmatpush.bf16.msra.mxu1 %v2019_v55 }
 0x269   :  { %1107 = vmatpush.bf16.msra.mxu2 %v2022_v2  ;;  %1120 = vmatpush.bf16.msra.mxu3 %v2026_v3 }
 0x26c   :  { %1082 = vmatpush.bf16.msra.mxu0 %v2028_v4  ;;  %1095 = vmatpush.bf16.msra.mxu1 %v2031_v10 }
 0x26d   :  { %1108 = vmatpush.bf16.msra.mxu2 %v2034_v14  ;;  %1121 = vmatpush.bf16.msra.mxu3 %v2038_v15 }
 0x2cb   :  { %v920_v30 = vpop.f32.mrf.mxu0  ;;  %v933_v16 = vpop.f32.mrf.mxu1 }
 0x2cc   :  { %v963_v27 = vadd.f32 %v920_v30, %v2135_v6  ;;  %v964_v17 = vadd.f32 %v933_v16, %v2425_v39 }
 0x2ce   :  { %v967_v29 = vmul.f32 0.5, %v963_v27  ;;  %v971_v40 = vmul.f32 0.5, %v964_v17 }
 0x2d0   :  { %1719 = vtanh.f32 %v967_v29 }
 0x2d1   :  { %1721 = vtanh.f32 %v971_v40  ;;  %v2428_v40 = vld [vmem:[#allocation21_spill] sm:$0xff] }
 0x2d2   :  { %v946_v19 = vpop.f32.mrf.mxu2  ;;  %v959_v31 = vpop.f32.mrf.mxu3 }
 0x2d3   :  { %v965_v23 = vadd.f32 %v946_v19, %v2426_v36  ;;  %v966_v56 = vadd.f32 %v959_v31, %v2427_v25  ;;  %v922_v28 = vpop.f32.mrf.mxu0  ;;  %v935_v54 = vpop.f32.mrf.mxu1  ;;  %v2429_v31 = vld [vmem:[#allocation22_spill] sm:$0xff] }
 0x2d4   :  { %v2430_v54 = vld [vmem:[#allocation23_spill] sm:$0xff] }
 0x2d5   :  { %1723 = vtanh.f32 %v965_v23  ;;  %v976_v57 = vmul.f32 0.5, %v966_v56 }
 0x2d6   :  { %v1720_v58 = vpop.eup %1719 }
 0x2d7   :  { %v1722_v45 = vpop.eup %1721  ;;  %v969_v44 = vmul.f32 0.5, %v1720_v58  ;;  %1725 = vtanh.f32 %v976_v57  ;;  %v2431_v58 = vld [vmem:[#allocation24_spill] sm:$0xff] }
 0x2d8   :  { %v973_v6 = vmul.f32 0.5, %v1722_v45 }
 0x2d9   :  { %v970_v52 = vadd.f32 0.5, %v969_v44 }
 0x2da   :  { %v974_v35 = vadd.f32 0.5, %v973_v6  ;;  %v948_v43 = vpop.f32.mrf.mxu2  ;;  %v961_v62 = vpop.f32.mrf.mxu3 }
 0x2db   :  { %v1724_v5 = vpop.eup %1723 }
 0x2dc   :  { %v980_v51 = vmul.f32 %v974_v35, %v2269_v12  ;;  %v981_v24 = vmul.f32 %v1724_v5, %v970_v52 }
 0x2dd   :  { %v1726_v63 = vpop.eup %1725 }
 0x2de   :  { %v2309_v11 = vadd.f32 %v981_v24, %v980_v51  ;;  %v978_v30 = vmul.f32 0.5, %v1726_v63 }
 0x2e0   :  { %1727 = vtanh.f32 %v2309_v11  ;;  %v979_v16 = vadd.f32 0.5, %v978_v30 }
 0x2e6   :  { %v1728_v27 = vpop.eup %1727 }
 0x2e7   :  { %v984_v39 = vmul.f32 %v1728_v27, %v979_v16 }
 0x2e9   :  { %v985_v17 = vpack.c.bf16 %v984_v39, %v984_v39 }
 0x2eb   :  { %987 = vst [vmem:[#allocation13 + $0xc] sm:$0xf] %v985_v17  ;;  %1001 = vmatmul.bf16.vlgmr.msrb.gmra.mxu0 %v985_v17  ;;  %1014 = vmatmul.bf16.vlgmr.msrb.gmra.mxu1 %v985_v17 }
 0x2ec   :  { %1027 = vmatmul.bf16.vlgmr.msrb.gmra.mxu2 %v985_v17  ;;  %1040 = vmatmul.bf16.vlgmr.msrb.gmra.mxu3 %v985_v17 }
 0x2ed   :  { %1157 = vmatpush.bf16.msrb.mxu0 %v1947_v37  ;;  %1170 = vmatpush.bf16.msrb.mxu1 %v1949_v41 }
 0x2ee   :  { %1183 = vmatpush.bf16.msrb.mxu2 %v1951_v47  ;;  %1196 = vmatpush.bf16.msrb.mxu3 %v1954_v48 }
 0x2f1   :  { %1158 = vmatpush.bf16.msrb.mxu0 %v1956_v49  ;;  %1171 = vmatpush.bf16.msrb.mxu1 %v1959_v53 }
 0x2f2   :  { %1184 = vmatpush.bf16.msrb.mxu2 %v1962_v59  ;;  %1197 = vmatpush.bf16.msrb.mxu3 %v1966_v60 }
 0x2f5   :  { %1159 = vmatpush.bf16.msrb.mxu0 %v1968_v61  ;;  %1172 = vmatpush.bf16.msrb.mxu1 %v1971_v1 }
 0x2f6   :  { %1185 = vmatpush.bf16.msrb.mxu2 %v1974_v7  ;;  %1198 = vmatpush.bf16.msrb.mxu3 %v1978_v8 }
 0x2f9   :  { %1160 = vmatpush.bf16.msrb.mxu0 %v1980_v9  ;;  %1173 = vmatpush.bf16.msrb.mxu1 %v1983_v13 }
 0x2fa   :  { %1186 = vmatpush.bf16.msrb.mxu2 %v1986_v20  ;;  %1199 = vmatpush.bf16.msrb.mxu3 %v1990_v21 }
 0x2fd   :  { %1161 = vmatpush.bf16.msrb.mxu0 %v1992_v22  ;;  %1174 = vmatpush.bf16.msrb.mxu1 %v1995_v26 }
 0x2fe   :  { %1187 = vmatpush.bf16.msrb.mxu2 %v1998_v32  ;;  %1200 = vmatpush.bf16.msrb.mxu3 %v2002_v33 }
 0x301   :  { %1162 = vmatpush.bf16.msrb.mxu0 %v2004_v34  ;;  %1175 = vmatpush.bf16.msrb.mxu1 %v2007_v38 }
 0x302   :  { %1188 = vmatpush.bf16.msrb.mxu2 %v2010_v42  ;;  %1201 = vmatpush.bf16.msrb.mxu3 %v2014_v46 }
 0x305   :  { %1163 = vmatpush.bf16.msrb.mxu0 %v2016_v50  ;;  %1176 = vmatpush.bf16.msrb.mxu1 %v2019_v55 }
 0x306   :  { %1189 = vmatpush.bf16.msrb.mxu2 %v2022_v2  ;;  %1202 = vmatpush.bf16.msrb.mxu3 %v2026_v3 }
 0x309   :  { %1164 = vmatpush.bf16.msrb.mxu0 %v2028_v4  ;;  %1177 = vmatpush.bf16.msrb.mxu1 %v2031_v10 }
 0x30a   :  { %1190 = vmatpush.bf16.msrb.mxu2 %v2034_v14  ;;  %1203 = vmatpush.bf16.msrb.mxu3 %v2038_v15 }
 0x368   :  { %v1002_v12 = vpop.f32.mrf.mxu0  ;;  %v1015_v29 = vpop.f32.mrf.mxu1 }
 0x369   :  { %v1045_v19 = vadd.f32 %v1002_v12, %v2428_v40  ;;  %v1046_v36 = vadd.f32 %v1015_v29, %v2429_v31 }
 0x36b   :  { %v1049_v23 = vmul.f32 0.5, %v1045_v19  ;;  %v1053_v25 = vmul.f32 0.5, %v1046_v36 }
 0x36d   :  { %1729 = vtanh.f32 %v1049_v23 }
 0x36e   :  { %1731 = vtanh.f32 %v1053_v25 }
 0x36f   :  { %v1028_v56 = vpop.f32.mrf.mxu2  ;;  %v1041_v28 = vpop.f32.mrf.mxu3 }
 0x370   :  { %v1047_v57 = vadd.f32 %v1028_v56, %v2430_v54  ;;  %v1048_v45 = vadd.f32 %v1041_v28, %v2431_v58  ;;  %v1004_v44 = vpop.f32.mrf.mxu0  ;;  %v1017_v6 = vpop.f32.mrf.mxu1  ;;  %v2436_v54 = vld [vmem:[#allocation29_spill] sm:$0xff]  ;;  %v2437_v58 = vld [vmem:[#allocation30_spill] sm:$0xff] }
 0x372   :  { %1733 = vtanh.f32 %v1047_v57  ;;  %v1058_v52 = vmul.f32 0.5, %v1048_v45 }
 0x373   :  { %v1730_v35 = vpop.eup %1729 }
 0x374   :  { %v1732_v43 = vpop.eup %1731  ;;  %v1051_v62 = vmul.f32 0.5, %v1730_v35  ;;  %1735 = vtanh.f32 %v1058_v52 }
 0x375   :  { %v1055_v5 = vmul.f32 0.5, %v1732_v43  ;;  %v2438_v43 = vld [vmem:[#allocation31_spill] sm:$0xff] }
 0x376   :  { %v1052_v51 = vadd.f32 0.5, %v1051_v62 }
 0x377   :  { %v1056_v24 = vadd.f32 0.5, %v1055_v5  ;;  %v1030_v63 = vpop.f32.mrf.mxu2  ;;  %v1043_v30 = vpop.f32.mrf.mxu3  ;;  %v2439_v5 = vld [vmem:[#allocation32_spill] sm:$0xff] }
 0x378   :  { %v1734_v16 = vpop.eup %1733 }
 0x379   :  { %v1062_v27 = vmul.f32 %v1056_v24, %v2309_v11  ;;  %v1063_v39 = vmul.f32 %v1734_v16, %v1052_v51 }
 0x37a   :  { %v1736_v17 = vpop.eup %1735 }
 0x37b   :  { %v2349_v12 = vadd.f32 %v1063_v39, %v1062_v27  ;;  %v1060_v29 = vmul.f32 0.5, %v1736_v17 }
 0x37d   :  { %1737 = vtanh.f32 %v2349_v12  ;;  %v1061_v40 = vadd.f32 0.5, %v1060_v29 }
 0x383   :  { %v1738_v19 = vpop.eup %1737 }
 0x384   :  { %v1066_v31 = vmul.f32 %v1738_v19, %v1061_v40 }
 0x386   :  { %v1067_v36 = vpack.c.bf16 %v1066_v31, %v1066_v31 }
 0x388   :  { %1069 = vst [vmem:[#allocation13 + $0x10] sm:$0xf] %v1067_v36  ;;  %1083 = vmatmul.bf16.vlgmr.msra.gmra.mxu0 %v1067_v36  ;;  %1096 = vmatmul.bf16.vlgmr.msra.gmra.mxu1 %v1067_v36 }
 0x389   :  { %1109 = vmatmul.bf16.vlgmr.msra.gmra.mxu2 %v1067_v36  ;;  %1122 = vmatmul.bf16.vlgmr.msra.gmra.mxu3 %v1067_v36 }
 0x38a   :  { %1239 = vmatpush.bf16.msra.mxu0 %v1947_v37  ;;  %1252 = vmatpush.bf16.msra.mxu1 %v1949_v41 }
 0x38b   :  { %1265 = vmatpush.bf16.msra.mxu2 %v1951_v47  ;;  %1278 = vmatpush.bf16.msra.mxu3 %v1954_v48  ;;  %v2432_v47 = vld [vmem:[#allocation25_spill] sm:$0xff] }
 0x38e   :  { %1240 = vmatpush.bf16.msra.mxu0 %v1956_v49  ;;  %1253 = vmatpush.bf16.msra.mxu1 %v1959_v53  ;;  %v2433_v49 = vld [vmem:[#allocation26_spill] sm:$0xff] }
 0x38f   :  { %1266 = vmatpush.bf16.msra.mxu2 %v1962_v59  ;;  %1279 = vmatpush.bf16.msra.mxu3 %v1966_v60 }
 0x392   :  { %1241 = vmatpush.bf16.msra.mxu0 %v1968_v61  ;;  %1254 = vmatpush.bf16.msra.mxu1 %v1971_v1 }
 0x393   :  { %1267 = vmatpush.bf16.msra.mxu2 %v1974_v7  ;;  %1280 = vmatpush.bf16.msra.mxu3 %v1978_v8  ;;  %v2434_v7 = vld [vmem:[#allocation27_spill] sm:$0xff] }
 0x396   :  { %1242 = vmatpush.bf16.msra.mxu0 %v1980_v9  ;;  %1255 = vmatpush.bf16.msra.mxu1 %v1983_v13  ;;  %v2435_v9 = vld [vmem:[#allocation28_spill] sm:$0xff] }
 0x397   :  { %1268 = vmatpush.bf16.msra.mxu2 %v1986_v20  ;;  %1281 = vmatpush.bf16.msra.mxu3 %v1990_v21 }
 0x39a   :  { %1243 = vmatpush.bf16.msra.mxu0 %v1992_v22  ;;  %1256 = vmatpush.bf16.msra.mxu1 %v1995_v26 }
 0x39b   :  { %1269 = vmatpush.bf16.msra.mxu2 %v1998_v32  ;;  %1282 = vmatpush.bf16.msra.mxu3 %v2002_v33 }
 0x39e   :  { %1244 = vmatpush.bf16.msra.mxu0 %v2004_v34  ;;  %1257 = vmatpush.bf16.msra.mxu1 %v2007_v38 }
 0x39f   :  { %1270 = vmatpush.bf16.msra.mxu2 %v2010_v42  ;;  %1283 = vmatpush.bf16.msra.mxu3 %v2014_v46 }
 0x3a2   :  { %1245 = vmatpush.bf16.msra.mxu0 %v2016_v50  ;;  %1258 = vmatpush.bf16.msra.mxu1 %v2019_v55 }
 0x3a3   :  { %1271 = vmatpush.bf16.msra.mxu2 %v2022_v2  ;;  %1284 = vmatpush.bf16.msra.mxu3 %v2026_v3 }
 0x3a6   :  { %1246 = vmatpush.bf16.msra.mxu0 %v2028_v4  ;;  %1259 = vmatpush.bf16.msra.mxu1 %v2031_v10 }
 0x3a7   :  { %1272 = vmatpush.bf16.msra.mxu2 %v2034_v14  ;;  %1285 = vmatpush.bf16.msra.mxu3 %v2038_v15 }
 0x405   :  { %v1084_v37 = vpop.f32.mrf.mxu0  ;;  %v1097_v41 = vpop.f32.mrf.mxu1 }
 0x406   :  { %v1127_v48 = vadd.f32 %v1084_v37, %v2432_v47  ;;  %v1128_v53 = vadd.f32 %v1097_v41, %v2433_v49 }
 0x408   :  { %v1131_v59 = vmul.f32 0.5, %v1127_v48  ;;  %v1135_v60 = vmul.f32 0.5, %v1128_v53 }
 0x40a   :  { %1739 = vtanh.f32 %v1131_v59 }
 0x40b   :  { %1741 = vtanh.f32 %v1135_v60 }
 0x40c   :  { %v1110_v61 = vpop.f32.mrf.mxu2  ;;  %v1123_v1 = vpop.f32.mrf.mxu3 }
 0x40d   :  { %v1129_v8 = vadd.f32 %v1110_v61, %v2434_v7  ;;  %v1130_v13 = vadd.f32 %v1123_v1, %v2435_v9  ;;  %v1086_v20 = vpop.f32.mrf.mxu0  ;;  %v1099_v21 = vpop.f32.mrf.mxu1 }
 0x40f   :  { %1743 = vtanh.f32 %v1129_v8  ;;  %v1140_v22 = vmul.f32 0.5, %v1130_v13 }
 0x410   :  { %v1740_v26 = vpop.eup %1739 }
 0x411   :  { %v1742_v32 = vpop.eup %1741  ;;  %v1133_v33 = vmul.f32 0.5, %v1740_v26  ;;  %1745 = vtanh.f32 %v1140_v22  ;;  %v2440_v22 = vld [vmem:[#allocation33_spill] sm:$0xff] }
 0x412   :  { %v1137_v34 = vmul.f32 0.5, %v1742_v32  ;;  %v2441_v32 = vld [vmem:[#allocation34_spill] sm:$0xff] }
 0x413   :  { %v1134_v38 = vadd.f32 0.5, %v1133_v33 }
 0x414   :  { %v1138_v42 = vadd.f32 0.5, %v1137_v34  ;;  %v1112_v46 = vpop.f32.mrf.mxu2  ;;  %v1125_v50 = vpop.f32.mrf.mxu3 }
 0x415   :  { %v1744_v55 = vpop.eup %1743 }
 0x416   :  { %v1144_v2 = vmul.f32 %v1138_v42, %v2349_v12  ;;  %v1145_v3 = vmul.f32 %v1744_v55, %v1134_v38 }
 0x417   :  { %v1746_v4 = vpop.eup %1745 }
 0x418   :  { %v1146_v10 = vadd.f32 %v1145_v3, %v1144_v2  ;;  %v1142_v14 = vmul.f32 0.5, %v1746_v4 }
 0x41a   :  { %1747 = vtanh.f32 %v1146_v10  ;;  %v1143_v15 = vadd.f32 0.5, %v1142_v14 }
 0x420   :  { %v1748_v11 = vpop.eup %1747 }
 0x421   :  { %v1148_v23 = vmul.f32 %v1748_v11, %v1143_v15 }
 0x423   :  { %v1149_v25 = vpack.c.bf16 %v1148_v23, %v1148_v23 }
 0x425   :  { %1151 = vst [vmem:[#allocation13 + $0x14] sm:$0xf] %v1149_v25  ;;  %1165 = vmatmul.bf16.vlgmr.msrb.gmra.mxu0 %v1149_v25  ;;  %1178 = vmatmul.bf16.vlgmr.msrb.gmra.mxu1 %v1149_v25 }
 0x426   :  { %1191 = vmatmul.bf16.vlgmr.msrb.gmra.mxu2 %v1149_v25  ;;  %1204 = vmatmul.bf16.vlgmr.msrb.gmra.mxu3 %v1149_v25 }
 0x4a2   :  { %v1166_v56 = vpop.f32.mrf.mxu0  ;;  %v1179_v28 = vpop.f32.mrf.mxu1 }
 0x4a3   :  { %v1209_v57 = vadd.f32 %v1166_v56, %v2436_v54  ;;  %v1210_v45 = vadd.f32 %v1179_v28, %v2437_v58 }
 0x4a5   :  { %v1213_v44 = vmul.f32 0.5, %v1209_v57  ;;  %v1217_v6 = vmul.f32 0.5, %v1210_v45 }
 0x4a7   :  { %1749 = vtanh.f32 %v1213_v44 }
 0x4a8   :  { %1751 = vtanh.f32 %v1217_v6 }
 0x4a9   :  { %v1192_v52 = vpop.f32.mrf.mxu2  ;;  %v1205_v35 = vpop.f32.mrf.mxu3 }
 0x4aa   :  { %v1211_v62 = vadd.f32 %v1192_v52, %v2438_v43  ;;  %v1212_v51 = vadd.f32 %v1205_v35, %v2439_v5  ;;  %v1168_v24 = vpop.f32.mrf.mxu0  ;;  %v1181_v63 = vpop.f32.mrf.mxu1 }
 0x4ac   :  { %1753 = vtanh.f32 %v1211_v62  ;;  %v1222_v30 = vmul.f32 0.5, %v1212_v51 }
 0x4ad   :  { %v1750_v16 = vpop.eup %1749 }
 0x4ae   :  { %v1752_v27 = vpop.eup %1751  ;;  %v1215_v39 = vmul.f32 0.5, %v1750_v16  ;;  %1755 = vtanh.f32 %v1222_v30 }
 0x4af   :  { %v1219_v17 = vmul.f32 0.5, %v1752_v27 }
 0x4b0   :  { %v1216_v12 = vadd.f32 0.5, %v1215_v39 }
 0x4b1   :  { %v1220_v29 = vadd.f32 0.5, %v1219_v17  ;;  %v1194_v40 = vpop.f32.mrf.mxu2  ;;  %v1207_v19 = vpop.f32.mrf.mxu3 }
 0x4b2   :  { %v1754_v31 = vpop.eup %1753 }
 0x4b3   :  { %v1226_v36 = vmul.f32 %v1220_v29, %v1146_v10  ;;  %v1227_v37 = vmul.f32 %v1754_v31, %v1216_v12 }
 0x4b4   :  { %v1756_v41 = vpop.eup %1755 }
 0x4b5   :  { %v1228_v47 = vadd.f32 %v1227_v37, %v1226_v36  ;;  %v1224_v48 = vmul.f32 0.5, %v1756_v41 }
 0x4b7   :  { %1757 = vtanh.f32 %v1228_v47  ;;  %v1225_v49 = vadd.f32 0.5, %v1224_v48 }
 0x4bd   :  { %v1758_v53 = vpop.eup %1757 }
 0x4be   :  { %v1230_v59 = vmul.f32 %v1758_v53, %v1225_v49 }
 0x4c0   :  { %v1231_v60 = vpack.c.bf16 %v1230_v59, %v1230_v59 }
 0x4c2   :  { %1233 = vst [vmem:[#allocation13 + $0x18] sm:$0xf] %v1231_v60  ;;  %1247 = vmatmul.bf16.vlgmr.msra.gmra.mxu0 %v1231_v60  ;;  %1260 = vmatmul.bf16.vlgmr.msra.gmra.mxu1 %v1231_v60 }
 0x4c3   :  { %1273 = vmatmul.bf16.vlgmr.msra.gmra.mxu2 %v1231_v60  ;;  %1286 = vmatmul.bf16.vlgmr.msra.gmra.mxu3 %v1231_v60 }
 0x53f   :  { %v1248_v61 = vpop.f32.mrf.mxu0  ;;  %v1261_v1 = vpop.f32.mrf.mxu1 }
 0x540   :  { %v1291_v7 = vadd.f32 %v1248_v61, %v2175_v18  ;;  %v1292_v8 = vadd.f32 %v1261_v1, %v2177_v0 }
 0x542   :  { %v1295_v9 = vmul.f32 0.5, %v1291_v7  ;;  %v1299_v13 = vmul.f32 0.5, %v1292_v8 }
 0x544   :  { %1759 = vtanh.f32 %v1295_v9 }
 0x545   :  { %1761 = vtanh.f32 %v1299_v13 }
 0x546   :  { %v1274_v20 = vpop.f32.mrf.mxu2  ;;  %v1287_v21 = vpop.f32.mrf.mxu3 }
 0x547   :  { %v1293_v26 = vadd.f32 %v1274_v20, %v2440_v22  ;;  %v1294_v33 = vadd.f32 %v1287_v21, %v2441_v32  ;;  %v1250_v34 = vpop.f32.mrf.mxu0  ;;  %v1263_v38 = vpop.f32.mrf.mxu1 }
 0x549   :  { %1763 = vtanh.f32 %v1293_v26  ;;  %v1304_v42 = vmul.f32 0.5, %v1294_v33 }
 0x54a   :  { %v1760_v46 = vpop.eup %1759 }
 0x54b   :  { %v1762_v50 = vpop.eup %1761  ;;  %v1297_v55 = vmul.f32 0.5, %v1760_v46  ;;  %1765 = vtanh.f32 %v1304_v42 }
 0x54c   :  { %v1301_v18 = vmul.f32 0.5, %v1762_v50 }
 0x54d   :  { %v1298_v0 = vadd.f32 0.5, %v1297_v55 }
 0x54e   :  { %v1302_v2 = vadd.f32 0.5, %v1301_v18  ;;  %v1276_v3 = vpop.f32.mrf.mxu2  ;;  %v1289_v4 = vpop.f32.mrf.mxu3 }
 0x54f   :  { %v1764_v10 = vpop.eup %1763 }
 0x550   :  { %v1308_v14 = vmul.f32 %v1302_v2, %v1228_v47  ;;  %v1309_v15 = vmul.f32 %v1764_v10, %v1298_v0 }
 0x551   :  { %v1766_v11 = vpop.eup %1765 }
 0x552   :  { %v1310_v23 = vadd.f32 %v1309_v15, %v1308_v14  ;;  %v1306_v25 = vmul.f32 0.5, %v1766_v11 }
 0x554   :  { %1767 = vtanh.f32 %v1310_v23  ;;  %v1307_v56 = vadd.f32 0.5, %v1306_v25 }
 0x55a   :  { %v1768_v28 = vpop.eup %1767 }
 0x55b   :  { %v1312_v54 = vmul.f32 %v1768_v28, %v1307_v56 }
 0x55d   :  { %v1313_v57 = vpack.c.bf16 %v1312_v54, %v1312_v54 }
 0x55f   :  { %1315 = vst [vmem:[#allocation13 + $0x1c] sm:$0xf] %v1313_v57 }
 0x560   :  { %1330 = dma.vmem_to_hbm [thread:$0]  %s1323_s3, 512, %s1325_s13, [#allocation7], %s1901_s27, %s1901_s27, %s1902_s28  }
 0x561   :  { %1895 = dma.done.wait [#allocation7], 512  }
 0x562   :  { %1896 = vsyncadd [#allocation7], 4294966784 }
 0x563   :  { %1335 = vsyncpa [#allocation6], 1 }
 0x564   :  { %1336 = vsyncpa [#allocation9], 1 }
 0x565   :  { %1337 = vsyncpa [#allocation12], 1 }
 0x566   :  { %1338 = vsyncpa [#allocation7], 1 }

</bundles_post_ra>
